<compile_context>
chip_gen: v7x
topology: tpu7x:2x2x1
jax: 0.10.0
libtpu: 0.0.40
codegen_flags: <defaults>
</compile_context>

<pallas_src>
import jax
import jax.numpy as jnp
from jax import lax
from jax.experimental import pallas as pl
from jax.experimental.pallas import tpu as pltpu


def _round_up(x, m):
    return ((x + m - 1) // m) * m


def _glove_kernel(i_idx_ref, j_idx_ref, wi_ref, wj_ref, o_ref):
    """One grid step over TB batch elements.

    i_idx_ref, j_idx_ref : (TB, 1) int32 index tiles (sublane-major)
    wi_ref, wj_ref       : (Vp, DA) f32 VMEM-resident augmented tables
    o_ref                : (1, TB) f32 lane-dense output tile
    """
    tb = i_idx_ref.shape[0]
    vp = wi_ref.shape[0]
    da = wi_ref.shape[1]

    # One-hot MXU gather: (TB, Vp) @ (Vp, DA) -> (TB, DA).
    vocab_iota = lax.broadcasted_iota(jnp.int32, (tb, vp), 1)
    onehot_i = (vocab_iota == i_idx_ref[...]).astype(jnp.float32)
    onehot_j = (vocab_iota == j_idx_ref[...]).astype(jnp.float32)

    gi = jnp.dot(onehot_i, wi_ref[...], preferred_element_type=jnp.float32)
    gj = jnp.dot(onehot_j, wj_ref[...], preferred_element_type=jnp.float32)

    prod = gi * gj                                   # (TB, DA) on the VPU

    # Reduce over DA with a trans-B MXU contraction so the result comes out
    # lane-dense: (8, DA) . (TB, DA)^T -> (8, TB); all 8 rows are identical.
    ones8 = jnp.ones((8, da), jnp.float32)           # one-vreg splat, negligible
    res = lax.dot_general(ones8, prod, (((1,), (1,)), ((), ())),
                          preferred_element_type=jnp.float32)
    o_ref[...] = res[0:1, :]


def glove_forward(i_idx, j_idx, wi, wj, bi, bj, *, tb=512):
    """Pallas GloVe forward: (B,) f32 = (wi[i]*wj[j]).sum(1) + bi[i] + bj[j]."""
    assert tb % 128 == 0, "tb must be a multiple of 128 (lane width)"
    B = i_idx.shape[0]
    V, D = wi.shape

    f32 = jnp.float32
    # Augmented-table layout so the bias adds ride along in the contraction:
    #   wi_aug = [wi | bi | 1 | 0...],  wj_aug = [wj | 1 | bj | 0...]
    #   sum_d wi_aug[i,d]*wj_aug[j,d] = dot(wi[i], wj[j]) + bi[i] + bj[j]
    da = _round_up(D + 2, 128)                 # augmented dim padded to lane multiple
    vp = _round_up(max(V, 8), 128)             # padded vocab rows (never indexed)

    bi_col = bi.astype(f32).reshape(V, 1)
    bj_col = bj.astype(f32).reshape(V, 1)
    ones_col = jnp.ones((V, 1), f32)

    def augment(w, c1, c2):
        cols = jnp.concatenate([w.astype(f32), c1, c2], axis=1)          # (V, D+2)
        return jnp.pad(cols, ((0, vp - V), (0, da - (D + 2))))           # (Vp, DA)

    wi_aug = augment(wi, bi_col, ones_col)
    wj_aug = augment(wj, ones_col, bj_col)

    # Pad the batch to a multiple of tb (index 0 is always valid; padded
    # results are sliced off below) and present indices as (b_pad, 1) columns.
    num_tiles = pl.cdiv(B, tb)
    b_pad = num_tiles * tb
    i_idx = i_idx.astype(jnp.int32).reshape(B)
    j_idx = j_idx.astype(jnp.int32).reshape(B)
    if b_pad != B:
        pad = b_pad - B
        i_idx = jnp.concatenate([i_idx, jnp.zeros((pad,), jnp.int32)])
        j_idx = jnp.concatenate([j_idx, jnp.zeros((pad,), jnp.int32)])
    i_col = i_idx.reshape(b_pad, 1)
    j_col = j_idx.reshape(b_pad, 1)

    # VMEM budget, derived from the actual chip capacity with headroom for
    # Mosaic internal scratch (review: no hard 56 MiB clamp).
    table_bytes = 2 * 2 * vp * da * 4           # two tables, double-buffered
    idx_bytes = 2 * 2 * tb * 128 * 4            # (tb,1) i32 tiles pad to 128 lanes
    temp_bytes = 2 * tb * vp * 4 + 4 * tb * da * 4   # one-hots + gi/gj/prod/res
    out_bytes = 2 * 8 * tb * 4
    need = table_bytes + idx_bytes + temp_bytes + out_bytes + (8 << 20)
    try:
        vmem_cap = int(pltpu.get_tpu_info().vmem_capacity_bytes)
    except Exception:
        vmem_cap = 64 << 20                     # conservative: v7x per-TC VMEM
    vmem_limit = int(max(16 << 20, min(need, vmem_cap - (12 << 20))))

    out = pl.pallas_call(
        _glove_kernel,
        out_shape=jax.ShapeDtypeStruct((1, b_pad), jnp.float32),
        grid=(num_tiles,),
        in_specs=[
            pl.BlockSpec((tb, 1), lambda t: (t, 0)),     # i indices, per-step tile
            pl.BlockSpec((tb, 1), lambda t: (t, 0)),     # j indices, per-step tile
            # Fully VMEM-resident augmented tables (constant block index, so the
            # pipeline DMAs them only once).  See TODO(synk) above for large V.
            pl.BlockSpec((vp, da), lambda t: (0, 0)),
            pl.BlockSpec((vp, da), lambda t: (0, 0)),
        ],
        out_specs=pl.BlockSpec((1, tb), lambda t: (0, t)),  # lane-dense output tile
        compiler_params=pltpu.CompilerParams(
            dimension_semantics=("parallel",),   # batch tiles split across v7x cores
            vmem_limit_bytes=vmem_limit,
        ),
    )(i_col, j_col, wi_aug, wj_aug)

    return out[0, :B]


def glove_reference(i_idx, j_idx, wi, wj, bi, bj):
    """Pure-JAX reference matching the PyTorch forward exactly."""
    wi_g = jnp.take(wi, i_idx, axis=0)
    wj_g = jnp.take(wj, j_idx, axis=0)
    bi_g = jnp.take(bi, i_idx, axis=0)[:, 0]
    bj_g = jnp.take(bj, j_idx, axis=0)[:, 0]
    return (wi_g * wj_g).sum(axis=1) + bi_g + bj_g


if __name__ == "__main__":
    vocab_size = 256
    embedding_dim = 100      # augmented dim (D+2) pads to 128 lanes
    batch = 1280             # 3 grid tiles of tb=512, with tail padding exercised

    key = jax.random.PRNGKey(0)
    k_wi, k_wj, k_bi, k_bj, k_i, k_j = jax.random.split(key, 6)

    # Xavier-uniform bound as in nn.init.xavier_uniform_ for (vocab, dim) weights.
    bound = (6.0 / (vocab_size + embedding_dim)) ** 0.5
    wi = jax.random.uniform(k_wi, (vocab_size, embedding_dim), jnp.float32,
                            minval=-bound, maxval=bound)
    wj = jax.random.uniform(k_wj, (vocab_size, embedding_dim), jnp.float32,
                            minval=-bound, maxval=bound)
    # Module inits biases to zeros; use small random values so the bias path
    # in the kernel is actually exercised.
    bi = 0.01 * jax.random.normal(k_bi, (vocab_size, 1), jnp.float32)
    bj = 0.01 * jax.random.normal(k_bj, (vocab_size, 1), jnp.float32)

    i_idx = jax.random.randint(k_i, (batch,), 0, vocab_size, dtype=jnp.int32)
    j_idx = jax.random.randint(k_j, (batch,), 0, vocab_size, dtype=jnp.int32)

    out = jax.jit(glove_forward)(i_idx, j_idx, wi, wj, bi, bj)
    out = jax.block_until_ready(out)

    ref = glove_reference(i_idx, j_idx, wi, wj, bi, bj)
    assert out.shape == (batch,), out.shape
    assert jnp.allclose(out, ref, atol=1e-4, rtol=1e-4), \
        float(jnp.max(jnp.abs(out - ref)))

    print("KERNEL_OK")
</pallas_src>

<mosaic_0001>
module attributes {stable_mosaic.version = 11 : i64} {
  func.func @_glove_kernel(%arg0: i32, %arg1: memref<512x1xi32, #tpu.memory_space<vmem>>, %arg2: memref<512x1xi32, #tpu.memory_space<vmem>>, %arg3: memref<256x128xf32, #tpu.memory_space<vmem>>, %arg4: memref<256x128xf32, #tpu.memory_space<vmem>>, %arg5: memref<1x512xf32, #tpu.memory_space<vmem>>) attributes {dimension_semantics = [#tpu.dimension_semantics<parallel>], iteration_bounds = array<i64: 3>, scalar_prefetch = 0 : i64, scratch_operands = 0 : i64, tpu.core_type = #tpu.core_type<tc>, window_params = [{transform_indices = @transform_0, window_bounds = array<i64: 512, 1>}, {transform_indices = @transform_1, window_bounds = array<i64: 512, 1>}, {pipeline_mode = #tpu.pipeline_mode<synchronous>, transform_indices = @transform_2, window_bounds = array<i64: 256, 128>}, {pipeline_mode = #tpu.pipeline_mode<synchronous>, transform_indices = @transform_3, window_bounds = array<i64: 256, 128>}, {transform_indices = @transform_4, window_bounds = array<i64: 1, 512>}]} {
    %0 = tpu.iota {dimensions = array<i32: 1>} : vector<512x256xi32>
    %c0 = arith.constant 0 : index
    %c0_0 = arith.constant 0 : index
    %1 = vector.load %arg1[%c0, %c0_0] : memref<512x1xi32, #tpu.memory_space<vmem>>, vector<512x1xi32>
    %2 = vector.broadcast %1 : vector<512x1xi32> to vector<512x256xi32>
    %3 = arith.cmpi eq, %0, %2 : vector<512x256xi32>
    %4 = arith.extui %3 : vector<512x256xi1> to vector<512x256xi32>
    %5 = arith.sitofp %4 : vector<512x256xi32> to vector<512x256xf32>
    %c0_1 = arith.constant 0 : index
    %c0_2 = arith.constant 0 : index
    %6 = vector.load %arg2[%c0_1, %c0_2] : memref<512x1xi32, #tpu.memory_space<vmem>>, vector<512x1xi32>
    %7 = vector.broadcast %6 : vector<512x1xi32> to vector<512x256xi32>
    %8 = arith.cmpi eq, %0, %7 : vector<512x256xi32>
    %9 = arith.extui %8 : vector<512x256xi1> to vector<512x256xi32>
    %10 = arith.sitofp %9 : vector<512x256xi32> to vector<512x256xf32>
    %c0_3 = arith.constant 0 : index
    %c0_4 = arith.constant 0 : index
    %11 = vector.load %arg3[%c0_3, %c0_4] : memref<256x128xf32, #tpu.memory_space<vmem>>, vector<256x128xf32>
    %cst = arith.constant dense<0.000000e+00> : vector<512x128xf32>
    %12 = tpu.matmul %5, %11, %cst {dimension_numbers = #tpu.dot_dimension_numbers<[1], [0], [0], [1], [0, 0, 1, 1], [], []>} : vector<512x256xf32>, vector<256x128xf32>, vector<512x128xf32> -> vector<512x128xf32>
    %c0_5 = arith.constant 0 : index
    %c0_6 = arith.constant 0 : index
    %13 = vector.load %arg4[%c0_5, %c0_6] : memref<256x128xf32, #tpu.memory_space<vmem>>, vector<256x128xf32>
    %cst_7 = arith.constant dense<0.000000e+00> : vector<512x128xf32>
    %14 = tpu.matmul %10, %13, %cst_7 {dimension_numbers = #tpu.dot_dimension_numbers<[1], [0], [0], [1], [0, 0, 1, 1], [], []>} : vector<512x256xf32>, vector<256x128xf32>, vector<512x128xf32> -> vector<512x128xf32>
    %15 = arith.mulf %12, %14 : vector<512x128xf32>
    %cst_8 = arith.constant 1.000000e+00 : f32
    %16 = vector.broadcast %cst_8 : f32 to vector<8x128xf32>
    %cst_9 = arith.constant dense<0.000000e+00> : vector<8x512xf32>
    %17 = tpu.matmul %16, %15, %cst_9 {dimension_numbers = #tpu.dot_dimension_numbers<[1], [1], [0], [0], [0, 0, 1, 0], [], []>} : vector<8x128xf32>, vector<512x128xf32>, vector<8x512xf32> -> vector<8x512xf32>
    %18 = vector.extract_strided_slice %17 {offsets = [0, 0], sizes = [1, 512], strides = [1, 1]} : vector<8x512xf32> to vector<1x512xf32>
    %c0_10 = arith.constant 0 : index
    %c0_11 = arith.constant 0 : index
    %19 = vector.load %arg5[%c0_10, %c0_11] : memref<1x512xf32, #tpu.memory_space<vmem>>, vector<1x512xf32>
    tpu.vector_store %arg5[%c0_10, %c0_11], %18 {strides = array<i32>} : memref<1x512xf32, #tpu.memory_space<vmem>>, vector<1x512xf32>,
    return
  }
  func.func @transform_0(%arg0: i32) -> (i32, i32) {
    %c0_i32 = arith.constant 0 : i32
    %c0_i32_0 = arith.constant 0 : i32
    return %arg0, %c0_i32 : i32, i32
  }
  func.func @transform_1(%arg0: i32) -> (i32, i32) {
    %c0_i32 = arith.constant 0 : i32
    %c0_i32_0 = arith.constant 0 : i32
    return %arg0, %c0_i32 : i32, i32
  }
  func.func @transform_2(%arg0: i32) -> (i32, i32) {
    %c0_i32 = arith.constant 0 : i32
    %c0_i32_0 = arith.constant 0 : i32
    %c0_i32_1 = arith.constant 0 : i32
    return %c0_i32, %c0_i32_0 : i32, i32
  }
  func.func @transform_3(%arg0: i32) -> (i32, i32) {
    %c0_i32 = arith.constant 0 : i32
    %c0_i32_0 = arith.constant 0 : i32
    %c0_i32_1 = arith.constant 0 : i32
    return %c0_i32, %c0_i32_0 : i32, i32
  }
  func.func @transform_4(%arg0: i32) -> (i32, i32) {
    %c0_i32 = arith.constant 0 : i32
    %c0_i32_0 = arith.constant 0 : i32
    return %c0_i32, %arg0 : i32, i32
  }
}

</mosaic_0001>

<bundles_post_ra>
// kernel: glove_forward.1
= control target key start
LH: loop header
LB: loop body
LE: loop exit
PB: predicated region body
PF: predicated region fallthrough
CT: control target
= control target key end

     0   :  { %s3443_s15 = smov 0   ;;  %s4491_s0 = inlined_call_operand.vmem [shape: s32[1536,1], index: 0, kind: input, shape index: {}]   ;;  %s4492_s1 = inlined_call_operand.vmem [shape: s32[1536,1], index: 1, kind: input, shape index: {}]   ;;  %s4493_s2 = inlined_call_operand.vmem [shape: f32[256,128], index: 2, kind: input, shape index: {}]   ;;  %s4494_s3 = inlined_call_operand.vmem [shape: f32[256,128], index: 3, kind: input, shape index: {}]   ;;  %s4495_s4 = inlined_call_operand.vmem [shape: f32[1,1536], index: 4, kind: output, shape index: {}]  }
   0x1 LB: > { %s2640_s16 = sadd.s32 4294967295, %s3412_s15   ;;  %p2644_p0 = scmp.ge.s32.totalorder %s3412_s15, 1  ;;  %s3412_s15 = sphi %s3443_s15, %s14_s15  }
   0x2   : > { %p174_p1 = scmp.lt.s32.totalorder %s3412_s15, 4 }
   0x4   : > { %p175_p2 = pnand %p2644_p0, %p174_p1 }
   0x5   : > { %s2645_s17 = sshll.u32 (!%p175_p2), %s2640_s16, 6  ;;  %v1504_v0 = vld [vmem:[%s4493_s2] sm:$0xff] (!%p175_p2)  ;;  %v1505_v1 = vld [vmem:[%s4493_s2 + $0x8] sm:$0xff] (!%p175_p2)  ;;  %v1506_v2 = vld [vmem:[%s4493_s2 + $0x10] sm:$0xff] (!%p175_p2)  ;;  %v3414_v3 = vmov (!%p175_p2), 0   ;;  %v3415_v8 = vmov (!%p175_p2), 0.0|0.0  }
   0x6   : > { %178 = sbr.rel (%p175_p2) target bundleno = 849 (0x351), region = 36  ;;  %3405 = vset.pattern.permute.xlu1 (!%p175_p2), %v3414_v3  ;;  %3404 = vset.pattern.permute.xlu0 (!%p175_p2), %v3414_v3  ;;  %p205_p3 = scmp.lt.s32.totalorder (!%p175_p2), %s2645_s17, 191  ;;  %v3233_v4 = vpack.c.bf16 (!%p175_p2), %v1505_v1, %v1504_v0  ;;  %v1507_v5 = vld [vmem:[%s4493_s2 + $0x18] sm:$0xff] (!%p175_p2)  ;;  %v1921_v6 = vld [vmem:[%s4494_s3] sm:$0xff] (!%p175_p2)  ;;  %v1922_v7 = vld [vmem:[%s4494_s3 + $0x8] sm:$0xff] (!%p175_p2) }
   0x7   : > { %3232 = vmatprep.subr.bf16.mxu0 (!%p175_p2), %v3415_v8  ;;  %3280 = vmatprep.subr.bf16.mxu1 (!%p175_p2), %v3415_v8  ;;  %v3281_v9 = vpack.c.bf16 (!%p175_p2), %v1922_v7, %v1921_v6  ;;  %v1923_v10 = vld [vmem:[%s4494_s3 + $0x10] sm:$0xff] (!%p175_p2)  ;;  %v3236_v11 = vpack.c.bf16 (!%p175_p2), %v1507_v5, %v1506_v2  ;;  %v1924_v12 = vld [vmem:[%s4494_s3 + $0x18] sm:$0xff] (!%p175_p2)  ;;  %v1508_v13 = vld [vmem:[%s4493_s2 + $0x20] sm:$0xff] (!%p175_p2) }
   0x8   : > { %3234 = vmatpush1.bf16.msra.mxu0 (!%p175_p2), %v3233_v4  ;;  %v1509_v14 = vld [vmem:[%s4493_s2 + $0x28] sm:$0xff] (!%p175_p2)  ;;  %v3284_v15 = vpack.c.bf16 (!%p175_p2), %v1924_v12, %v1923_v10  ;;  %v1925_v16 = vld [vmem:[%s4494_s3 + $0x20] sm:$0xff] (!%p175_p2)  ;;  %v1510_v21 = vld [vmem:[%s4493_s2 + $0x30] sm:$0xff] (!%p175_p2) }
   0x9   : > { %3235 = vmatprep.subr.bf16.mxu0 (!%p175_p2), %v3415_v8  ;;  %3282 = vmatpush1.bf16.msra.mxu1 (!%p175_p2), %v3281_v9  ;;  %v1926_v17 = vld [vmem:[%s4494_s3 + $0x28] sm:$0xff] (!%p175_p2)  ;;  %v3239_v20 = vpack.c.bf16 (!%p175_p2), %v1509_v14, %v1508_v13  ;;  %v1511_v22 = vld [vmem:[%s4493_s2 + $0x38] sm:$0xff] (!%p175_p2)  ;;  %v1927_v26 = vld [vmem:[%s4494_s3 + $0x30] sm:$0xff] (!%p175_p2) }
   0xa   : > { %3283 = vmatprep.subr.bf16.mxu1 (!%p175_p2), %v3415_v8  ;;  %v3287_v25 = vpack.c.bf16 (!%p175_p2), %v1926_v17, %v1925_v16  ;;  %v1928_v27 = vld [vmem:[%s4494_s3 + $0x38] sm:$0xff] (!%p175_p2)  ;;  %v3242_v28 = vpack.c.bf16 (!%p175_p2), %v1511_v22, %v1510_v21  ;;  %v1512_v29 = vld [vmem:[%s4493_s2 + $0x40] sm:$0xff] (!%p175_p2)  ;;  %v1513_v30 = vld [vmem:[%s4493_s2 + $0x48] sm:$0xff] (!%p175_p2) }
   0xb   : > { %v3290_v33 = vpack.c.bf16 (!%p175_p2), %v1928_v27, %v1927_v26  ;;  %v3245_v34 = vpack.c.bf16 (!%p175_p2), %v1513_v30, %v1512_v29  ;;  %v1514_v35 = vld [vmem:[%s4493_s2 + $0x50] sm:$0xff] (!%p175_p2)  ;;  %v1515_v36 = vld [vmem:[%s4493_s2 + $0x58] sm:$0xff] (!%p175_p2)  ;;  %v1929_v40 = vld [vmem:[%s4494_s3 + $0x40] sm:$0xff] (!%p175_p2) }
   0xc   : > { %3237 = vmatpush1.bf16.msra.mxu0 (!%p175_p2), %v3236_v11  ;;  %v3248_v39 = vpack.c.bf16 (!%p175_p2), %v1515_v36, %v1514_v35  ;;  %v1930_v43 = vld [vmem:[%s4494_s3 + $0x48] sm:$0xff] (!%p175_p2)  ;;  %v1516_v45 = vld [vmem:[%s4493_s2 + $0x60] sm:$0xff] (!%p175_p2)  ;;  %v1931_v47 = vld [vmem:[%s4494_s3 + $0x50] sm:$0xff] (!%p175_p2) }
   0xd   : > { %s4497_s17 = smov (!%p205_p3, %s2645_s17), 191  ;;  %3238 = vmatprep.subr.bf16.mxu0 %v3415_v8  ;;  %3285 = vmatpush1.bf16.msra.mxu1 %v3284_v15  ;;  %v3293_v44 = vpack.c.bf16 %v1930_v43, %v1929_v40  ;;  %v1517_v46 = vld [vmem:[%s4493_s2 + $0x68] sm:$0xff]  ;;  %v1932_v48 = vld [vmem:[%s4494_s3 + $0x58] sm:$0xff]  ;;  %v1518_v50 = vld [vmem:[%s4493_s2 + $0x70] sm:$0xff] }
   0xe   : > { %s2646_s12 = sshll.u32 %s4497_s17, 3  ;;  %3286 = vmatprep.subr.bf16.mxu1 %v3415_v8  ;;  %v3251_v49 = vpack.c.bf16 %v1517_v46, %v1516_v45  ;;  %v3296_v53 = vpack.c.bf16 %v1932_v48, %v1931_v47  ;;  %v1519_v54 = vld [vmem:[%s4493_s2 + $0x78] sm:$0xff]  ;;  %v1933_v55 = vld [vmem:[%s4494_s3 + $0x60] sm:$0xff]  ;;  %v1934_v56 = vld [vmem:[%s4494_s3 + $0x68] sm:$0xff] }
   0xf   : > { %s3490_s18 = scalar_lea.vmem %s4491_s0, %s2646_s12  ;;  %s3495_s21 = scalar_lea.vmem %s4492_s1, %s2646_s12  ;;  %v3254_v57 = vpack.c.bf16 %v1519_v54, %v1518_v50  ;;  %v1520_v58 = vld [vmem:[%s4493_s2 + $0x80] sm:$0xff]  ;;  %v1521_v59 = vld [vmem:[%s4493_s2 + $0x88] sm:$0xff]  ;;  %v3299_v62 = vpack.c.bf16 %v1934_v56, %v1933_v55  ;;  %v1935_v63 = vld [vmem:[%s4494_s3 + $0x70] sm:$0xff] }
  0x10   : > { %v225_v18 = vld [vmem:[%s3490_s18 + $0x8] sm:$0xff]  ;;  %v224_v19 = vld [vmem:[%s3490_s18] sm:$0xff]  ;;  %3240 = vmatpush1.bf16.msra.mxu0 %v3239_v20  ;;  %v866_v31 = vld [vmem:[%s3495_s21 + $0x10] sm:$0xff]  ;;  %v3257_v1 = vpack.c.bf16 %v1521_v59, %v1520_v58 }
  0x11   : > { %292 = vperm.xlu1 %3405, %v225_v18   ;;  %289 = vperm.xlu0 %3404, %v224_v19   ;;  %v865_v23 = vld [vmem:[%s3495_s21 + $0x8] sm:$0xff]  ;;  %v864_v24 = vld [vmem:[%s3495_s21] sm:$0xff]  ;;  %v226_v32 = vld [vmem:[%s3490_s18 + $0x10] sm:$0xff] }
  0x12   : > { %3241 = vmatprep.subr.bf16.mxu0 %v3415_v8  ;;  %3288 = vmatpush1.bf16.msra.mxu1 %v3287_v25  ;;  %v867_v37 = vld [vmem:[%s3495_s21 + $0x18] sm:$0xff]  ;;  %v868_v41 = vld [vmem:[%s3495_s21 + $0x20] sm:$0xff]  ;;  %v869_v51 = vld [vmem:[%s3495_s21 + $0x28] sm:$0xff] }
  0x13   : > { %3289 = vmatprep.subr.bf16.mxu1 %v3415_v8  ;;  %v227_v38 = vld [vmem:[%s3490_s18 + $0x18] sm:$0xff]  ;;  %v228_v42 = vld [vmem:[%s3490_s18 + $0x20] sm:$0xff]  ;;  %v229_v52 = vld [vmem:[%s3490_s18 + $0x28] sm:$0xff] }
  0x14   : > { %3243 = vmatpush1.bf16.msra.mxu0 %v3242_v28  ;;  %v870_v60 = vld [vmem:[%s3495_s21 + $0x30] sm:$0xff]  ;;  %v1936_v0 = vld [vmem:[%s4494_s3 + $0x78] sm:$0xff]  ;;  %v1937_v7 = vld [vmem:[%s4494_s3 + $0x80] sm:$0xff] }
  0x15   : > { %932 = vperm.xlu1 %3405, %v865_v23   ;;  %929 = vperm.xlu0 %3404, %v864_v24   ;;  %v230_v61 = vld [vmem:[%s3490_s18 + $0x30] sm:$0xff]  ;;  %v1523_v3 = vld [vmem:[%s4493_s2 + $0x98] sm:$0xff]  ;;  %v3302_v6 = vpack.c.bf16 %v1936_v0, %v1935_v63  ;;  %v1938_v9 = vld [vmem:[%s4494_s3 + $0x88] sm:$0xff] }
  0x16   : > { %3244 = vmatprep.subr.bf16.mxu0 %v3415_v8  ;;  %3291 = vmatpush1.bf16.msra.mxu1 %v3290_v33  ;;  %v1522_v2 = vld [vmem:[%s4493_s2 + $0x90] sm:$0xff]  ;;  %v871_v4 = vld [vmem:[%s3495_s21 + $0x38] sm:$0xff]  ;;  %v1524_v11 = vld [vmem:[%s4493_s2 + $0xa0] sm:$0xff]  ;;  %v3305_v15 = vpack.c.bf16 %v1938_v9, %v1937_v7 }
  0x17   : > { %3292 = vmatprep.subr.bf16.mxu1 %v3415_v8  ;;  %v231_v5 = vld [vmem:[%s3490_s18 + $0x38] sm:$0xff]  ;;  %v3260_v10 = vpack.c.bf16 %v1523_v3, %v1522_v2  ;;  %v1525_v12 = vld [vmem:[%s4493_s2 + $0xa8] sm:$0xff]  ;;  %v872_v13 = vld [vmem:[%s3495_s21 + $0x40] sm:$0xff] }
  0x18   : > { %3246 = vmatpush1.bf16.msra.mxu0 %v3245_v34  ;;  %v232_v14 = vld [vmem:[%s3490_s18 + $0x40] sm:$0xff]  ;;  %v1939_v16 = vld [vmem:[%s4494_s3 + $0x90] sm:$0xff]  ;;  %v1940_v17 = vld [vmem:[%s4494_s3 + $0x98] sm:$0xff]  ;;  %v3263_v18 = vpack.c.bf16 %v1525_v12, %v1524_v11 }
  0x19   : > { %935 = vperm.xlu1 %3405, %v866_v31   ;;  %295 = vperm.xlu0 %3404, %v226_v32   ;;  %v1526_v19 = vld [vmem:[%s4493_s2 + $0xb0] sm:$0xff]  ;;  %v1527_v20 = vld [vmem:[%s4493_s2 + $0xb8] sm:$0xff]  ;;  %v873_v21 = vld [vmem:[%s3495_s21 + $0x48] sm:$0xff]  ;;  %v3308_v23 = vpack.c.bf16 %v1940_v17, %v1939_v16 }
  0x1a   : > { %3247 = vmatprep.subr.bf16.mxu0 %v3415_v8  ;;  %3294 = vmatpush1.bf16.msra.mxu1 %v3293_v44  ;;  %v233_v22 = vld [vmem:[%s3490_s18 + $0x48] sm:$0xff]  ;;  %v1941_v24 = vld [vmem:[%s4494_s3 + $0xa0] sm:$0xff]  ;;  %v3266_v26 = vpack.c.bf16 %v1527_v20, %v1526_v19  ;;  %v874_v29 = vld [vmem:[%s3495_s21 + $0x50] sm:$0xff] }
  0x1b   : > { %3295 = vmatprep.subr.bf16.mxu1 %v3415_v8  ;;  %v1942_v25 = vld [vmem:[%s4494_s3 + $0xa8] sm:$0xff]  ;;  %v1528_v27 = vld [vmem:[%s4493_s2 + $0xc0] sm:$0xff]  ;;  %v234_v30 = vld [vmem:[%s3490_s18 + $0x50] sm:$0xff] }
  0x1c   : > { %3249 = vmatpush1.bf16.msra.mxu0 %v3248_v39  ;;  %v1529_v28 = vld [vmem:[%s4493_s2 + $0xc8] sm:$0xff]  ;;  %v3311_v31 = vpack.c.bf16 %v1942_v25, %v1941_v24  ;;  %v1943_v32 = vld [vmem:[%s4494_s3 + $0xb0] sm:$0xff]  ;;  %v1944_v33 = vld [vmem:[%s4494_s3 + $0xb8] sm:$0xff] }
  0x1d   : > { %938 = vperm.xlu1 %3405, %v867_v37   ;;  %298 = vperm.xlu0 %3404, %v227_v38   ;;  %v3269_v34 = vpack.c.bf16 %v1529_v28, %v1528_v27  ;;  %v1530_v35 = vld [vmem:[%s4493_s2 + $0xd0] sm:$0xff]  ;;  %v1531_v36 = vld [vmem:[%s4493_s2 + $0xd8] sm:$0xff]  ;;  %v3314_v39 = vpack.c.bf16 %v1944_v33, %v1943_v32  ;;  %v1945_v40 = vld [vmem:[%s4494_s3 + $0xc0] sm:$0xff] }
  0x1e   : > { %3250 = vmatprep.subr.bf16.mxu0 %v3415_v8  ;;  %3297 = vmatpush1.bf16.msra.mxu1 %v3296_v53  ;;  %v875_v37 = vld [vmem:[%s3495_s21 + $0x58] sm:$0xff]  ;;  %v1532_v43 = vld [vmem:[%s4493_s2 + $0xe0] sm:$0xff]  ;;  %v1533_v44 = vld [vmem:[%s4493_s2 + $0xe8] sm:$0xff] }
  0x1f   : > { %3298 = vmatprep.subr.bf16.mxu1 %v3415_v8  ;;  %v235_v38 = vld [vmem:[%s3490_s18 + $0x58] sm:$0xff]  ;;  %v876_v45 = vld [vmem:[%s3495_s21 + $0x60] sm:$0xff]  ;;  %v1947_v48 = vld [vmem:[%s4494_s3 + $0xd0] sm:$0xff]  ;;  %v3275_v50 = vpack.c.bf16 %v1533_v44, %v1532_v43 }
  0x20   : > { %3252 = vmatpush1.bf16.msra.mxu0 %v3251_v49  ;;  %v236_v46 = vld [vmem:[%s3490_s18 + $0x60] sm:$0xff]  ;;  %v1948_v49 = vld [vmem:[%s4494_s3 + $0xd8] sm:$0xff]  ;;  %v877_v53 = vld [vmem:[%s3495_s21 + $0x68] sm:$0xff] }
  0x21   : > { %941 = vperm.xlu1 %3405, %v868_v41   ;;  %301 = vperm.xlu0 %3404, %v228_v42   ;;  %v1946_v41 = vld [vmem:[%s4494_s3 + $0xc8] sm:$0xff]  ;;  %v3272_v42 = vpack.c.bf16 %v1531_v36, %v1530_v35  ;;  %v3320_v55 = vpack.c.bf16 %v1948_v49, %v1947_v48  ;;  %v1949_v56 = vld [vmem:[%s4494_s3 + $0xe0] sm:$0xff]  ;;  %v878_v59 = vld [vmem:[%s3495_s21 + $0x70] sm:$0xff] }
  0x22   : > { %3253 = vmatprep.subr.bf16.mxu0 %v3415_v8  ;;  %3300 = vmatpush1.bf16.msra.mxu1 %v3299_v62  ;;  %v3317_v47 = vpack.c.bf16 %v1946_v41, %v1945_v40  ;;  %v237_v54 = vld [vmem:[%s3490_s18 + $0x68] sm:$0xff]  ;;  %v1951_v62 = vld [vmem:[%s4494_s3 + $0xf0] sm:$0xff]  ;;  %v1952_v63 = vld [vmem:[%s4494_s3 + $0xf8] sm:$0xff] }
  0x23   : > { %3301 = vmatprep.subr.bf16.mxu1 %v3415_v8  ;;  %v879_v0 = vld [vmem:[%s3495_s21 + $0x78] sm:$0xff]  ;;  %v3326_v2 = vpack.c.bf16 %v1952_v63, %v1951_v62  ;;  %v880_v3 = vld [vmem:[%s3495_s21 + $0x80] sm:$0xff]  ;;  %v882_v7 = vld [vmem:[%s3495_s21 + $0x90] sm:$0xff] }
  0x24   : > { %3255 = vmatpush1.bf16.msra.mxu0 %v3254_v57  ;;  %v1950_v57 = vld [vmem:[%s4494_s3 + $0xe8] sm:$0xff]  ;;  %v883_v9 = vld [vmem:[%s3495_s21 + $0x98] sm:$0xff]  ;;  %v884_v11 = vld [vmem:[%s3495_s21 + $0xa0] sm:$0xff] }
  0x25   : > { %944 = vperm.xlu1 %3405, %v869_v51   ;;  %304 = vperm.xlu0 %3404, %v229_v52   ;;  %v1534_v51 = vld [vmem:[%s4493_s2 + $0xf0] sm:$0xff]  ;;  %v1535_v52 = vld [vmem:[%s4493_s2 + $0xf8] sm:$0xff]  ;;  %v244_v12 = vld [vmem:[%s3490_s18 + $0xa0] sm:$0xff] }
  0x26   : > { %3256 = vmatprep.subr.bf16.mxu0 %v3415_v8  ;;  %3303 = vmatpush1.bf16.msra.mxu1 %v3302_v6  ;;  %v3278_v58 = vpack.c.bf16 %v1535_v52, %v1534_v51  ;;  %v241_v6 = vld [vmem:[%s3490_s18 + $0x88] sm:$0xff]  ;;  %v246_v16 = vld [vmem:[%s3490_s18 + $0xb0] sm:$0xff]  ;;  %v887_v17 = vld [vmem:[%s3495_s21 + $0xb8] sm:$0xff] }
  0x27   : > { %3304 = vmatprep.subr.bf16.mxu1 %v3415_v8  ;;  %v888_v19 = vld [vmem:[%s3495_s21 + $0xc0] sm:$0xff]  ;;  %v250_v24 = vld [vmem:[%s3490_s18 + $0xd0] sm:$0xff]  ;;  %v891_v25 = vld [vmem:[%s3495_s21 + $0xd8] sm:$0xff] }
  0x28   : > { %3258 = vmatpush1.bf16.msra.mxu0 %v3257_v1  ;;  %v239_v1 = vld [vmem:[%s3490_s18 + $0x78] sm:$0xff]  ;;  %v248_v20 = vld [vmem:[%s3490_s18 + $0xc0] sm:$0xff]  ;;  %v894_v32 = vld [vmem:[%s3495_s21 + $0xf0] sm:$0xff] }
  0x29   : > { %947 = vperm.xlu1 %3405, %v870_v60   ;;  %307 = vperm.xlu0 %3404, %v230_v61   ;;  %v238_v60 = vld [vmem:[%s3490_s18 + $0x70] sm:$0xff]  ;;  %v3323_v61 = vpack.c.bf16 %v1950_v57, %v1949_v56  ;;  %v892_v27 = vld [vmem:[%s3495_s21 + $0xe0] sm:$0xff]  ;;  %v895_v35 = vld [vmem:[%s3495_s21 + $0xf8] sm:$0xff] }
  0x2a   : > { %3259 = vmatprep.subr.bf16.mxu0 %v3415_v8  ;;  %3306 = vmatpush1.bf16.msra.mxu1 %v3305_v15  ;;  %v886_v15 = vld [vmem:[%s3495_s21 + $0xb0] sm:$0xff]  ;;  %v252_v28 = vld [vmem:[%s3490_s18 + $0xe0] sm:$0xff]  ;;  %v255_v36 = vld [vmem:[%s3490_s18 + $0xf8] sm:$0xff] }
  0x2b   : > { %3307 = vmatprep.subr.bf16.mxu1 %v3415_v8  ;;  %v254_v33 = vld [vmem:[%s3490_s18 + $0xf0] sm:$0xff]  ;;  %v897_v43 = vld [vmem:[%s3495_s21 + $0x108] sm:$0xff]  ;;  %v899_v51 = vld [vmem:[%s3495_s21 + $0x118] sm:$0xff] }
  0x2c   : > { %3261 = vmatpush1.bf16.msra.mxu0 %v3260_v10  ;;  %v243_v10 = vld [vmem:[%s3490_s18 + $0x98] sm:$0xff]  ;;  %v257_v44 = vld [vmem:[%s3490_s18 + $0x108] sm:$0xff]  ;;  %v258_v48 = vld [vmem:[%s3490_s18 + $0x110] sm:$0xff] }
  0x2d   : > { %950 = vperm.xlu1 %3405, %v871_v4   ;;  %310 = vperm.xlu0 %3404, %v231_v5   ;;  %v240_v4 = vld [vmem:[%s3490_s18 + $0x80] sm:$0xff]  ;;  %v881_v5 = vld [vmem:[%s3495_s21 + $0x88] sm:$0xff]  ;;  %v259_v52 = vld [vmem:[%s3490_s18 + $0x118] sm:$0xff] }
  0x2e   : > { %3262 = vmatprep.subr.bf16.mxu0 %v3415_v8  ;;  %3309 = vmatpush1.bf16.msra.mxu1 %v3308_v23  ;;  %v890_v23 = vld [vmem:[%s3495_s21 + $0xd0] sm:$0xff]  ;;  %v260_v56 = vld [vmem:[%s3490_s18 + $0x120] sm:$0xff] }
  0x2f   : > { %3310 = vmatprep.subr.bf16.mxu1 %v3415_v8  ;;  %v902_v63 = vld [vmem:[%s3495_s21 + $0x130] sm:$0xff] }
  0x30   : > { %3264 = vmatpush1.bf16.msra.mxu0 %v3263_v18  ;;  %v247_v18 = vld [vmem:[%s3490_s18 + $0xb8] sm:$0xff] }
  0x31   : > { %953 = vperm.xlu1 %3405, %v872_v13   ;;  %313 = vperm.xlu0 %3404, %v232_v14   ;;  %v885_v13 = vld [vmem:[%s3495_s21 + $0xa8] sm:$0xff] }
  0x32   : > { %3265 = vmatprep.subr.bf16.mxu0 %v3415_v8  ;;  %3312 = vmatpush1.bf16.msra.mxu1 %v3311_v31  ;;  %v245_v14 = vld [vmem:[%s3490_s18 + $0xa8] sm:$0xff]  ;;  %v221_v31 = vlaneseq }
  0x33   : > { %3313 = vmatprep.subr.bf16.mxu1 %v3415_v8 }
  0x34   : > { %3267 = vmatpush1.bf16.msra.mxu0 %v3266_v26  ;;  %v251_v26 = vld [vmem:[%s3490_s18 + $0xd8] sm:$0xff] }
  0x35   : > { %956 = vperm.xlu1 %3405, %v873_v21   ;;  %316 = vperm.xlu0 %3404, %v233_v22   ;;  %v889_v21 = vld [vmem:[%s3495_s21 + $0xc8] sm:$0xff] }
  0x36   : > { %3268 = vmatprep.subr.bf16.mxu0 %v3415_v8  ;;  %3315 = vmatpush1.bf16.msra.mxu1 %v3314_v39  ;;  %v249_v22 = vld [vmem:[%s3490_s18 + $0xc8] sm:$0xff]  ;;  %v256_v39 = vld [vmem:[%s3490_s18 + $0x100] sm:$0xff] }
  0x37   : > { %3316 = vmatprep.subr.bf16.mxu1 %v3415_v8 }
  0x38   : > { %3270 = vmatpush1.bf16.msra.mxu0 %v3269_v34  ;;  %v3750_v34 = vand.u32 127, %v221_v31 }
  0x39   : > { %959 = vperm.xlu1 %3405, %v874_v29   ;;  %319 = vperm.xlu0 %3404, %v234_v30   ;;  %v893_v29 = vld [vmem:[%s3495_s21 + $0xe8] sm:$0xff] }
  0x3a   : > { %3271 = vmatprep.subr.bf16.mxu0 %v3415_v8  ;;  %3318 = vmatpush1.bf16.msra.mxu1 %v3317_v47  ;;  %v253_v30 = vld [vmem:[%s3490_s18 + $0xe8] sm:$0xff]  ;;  %v898_v47 = vld [vmem:[%s3495_s21 + $0x110] sm:$0xff] }
  0x3b   : > { %3319 = vmatprep.subr.bf16.mxu1 %v3415_v8 }
  0x3c   : > { %3273 = vmatpush1.bf16.msra.mxu0 %v3272_v42  ;;  %v3416_v42 = vmov 1.0  }
  0x3d   : > { %962 = vperm.xlu1 %3405, %v875_v37   ;;  %322 = vperm.xlu0 %3404, %v235_v38   ;;  %v3755_v37 = vadd.s32 128, %v3750_v34  ;;  %v896_v38 = vld [vmem:[%s3495_s21 + $0x100] sm:$0xff] }
  0x3e   : > { %3274 = vmatprep.subr.bf16.mxu0 %v3415_v8  ;;  %3321 = vmatpush1.bf16.msra.mxu1 %v3320_v55  ;;  %v900_v55 = vld [vmem:[%s3495_s21 + $0x120] sm:$0xff] }
  0x3f   : > { %3322 = vmatprep.subr.bf16.mxu1 %v3415_v8 }
  0x40   : > { %3276 = vmatpush1.bf16.msra.mxu0 %v3275_v50 }
  0x41   : > { %965 = vperm.xlu1 %3405, %v876_v45   ;;  %325 = vperm.xlu0 %3404, %v236_v46  }
  0x42   : > { %3277 = vmatprep.subr.bf16.mxu0 %v3415_v8  ;;  %3324 = vmatpush1.bf16.msra.mxu1 %v3323_v61 }
  0x43   : > { %3325 = vmatprep.subr.bf16.mxu1 %v3415_v8  ;;  %v242_v8 = vld [vmem:[%s3490_s18 + $0x90] sm:$0xff] }
  0x44   : > { %3279 = vmatpush1.bf16.msra.mxu0 %v3278_v58 }
  0x45   : > { %968 = vperm.xlu1 %3405, %v877_v53   ;;  %328 = vperm.xlu0 %3404, %v237_v54  }
  0x46   : > { %3327 = vmatpush1.bf16.msra.mxu1 %v3326_v2 }
  0x49   : > { %971 = vperm.xlu1 %3405, %v878_v59   ;;  %331 = vperm.xlu0 %3404, %v238_v60   ;;  %v901_v59 = vld [vmem:[%s3495_s21 + $0x128] sm:$0xff] }
  0x4a   : > { %v261_v60 = vld [vmem:[%s3490_s18 + $0x128] sm:$0xff] }
  0x4d   : > { %974 = vperm.xlu1 %3405, %v879_v0   ;;  %334 = vperm.xlu0 %3404, %v239_v1   ;;  %v262_v0 = vld [vmem:[%s3490_s18 + $0x130] sm:$0xff] }
  0x51   : > { %977 = vperm.xlu1 %3405, %v880_v3   ;;  %337 = vperm.xlu0 %3404, %v240_v4   ;;  %v903_v3 = vld [vmem:[%s3495_s21 + $0x138] sm:$0xff] }
  0x52   : > { %v263_v4 = vld [vmem:[%s3490_s18 + $0x138] sm:$0xff] }
  0x55   : > { %980 = vperm.xlu1 %3405, %v881_v5   ;;  %340 = vperm.xlu0 %3404, %v241_v6  }
  0x59   : > { %983 = vperm.xlu1 %3405, %v882_v7   ;;  %343 = vperm.xlu0 %3404, %v242_v8   ;;  %v904_v7 = vld [vmem:[%s3495_s21 + $0x140] sm:$0xff] }
  0x5a   : > { %v264_v8 = vld [vmem:[%s3490_s18 + $0x140] sm:$0xff] }
  0x5d   : > { %986 = vperm.xlu1 %3405, %v883_v9   ;;  %346 = vperm.xlu0 %3404, %v243_v10  }
  0x61   : > { %989 = vperm.xlu1 %3405, %v884_v11   ;;  %349 = vperm.xlu0 %3404, %v244_v12   ;;  %v905_v11 = vld [vmem:[%s3495_s21 + $0x148] sm:$0xff] }
  0x62   : > { %v265_v12 = vld [vmem:[%s3490_s18 + $0x148] sm:$0xff] }
  0x65   : > { %992 = vperm.xlu1 %3405, %v885_v13   ;;  %352 = vperm.xlu0 %3404, %v245_v14  }
  0x69   : > { %995 = vperm.xlu1 %3405, %v886_v15   ;;  %355 = vperm.xlu0 %3404, %v246_v16   ;;  %v906_v15 = vld [vmem:[%s3495_s21 + $0x150] sm:$0xff] }
  0x6a   : > { %v266_v16 = vld [vmem:[%s3490_s18 + $0x150] sm:$0xff] }
  0x6d   : > { %998 = vperm.xlu1 %3405, %v887_v17   ;;  %358 = vperm.xlu0 %3404, %v247_v18  }
  0x71   : > { %1001 = vperm.xlu1 %3405, %v888_v19   ;;  %361 = vperm.xlu0 %3404, %v248_v20   ;;  %v907_v19 = vld [vmem:[%s3495_s21 + $0x158] sm:$0xff] }
  0x72   : > { %v267_v20 = vld [vmem:[%s3490_s18 + $0x158] sm:$0xff] }
  0x75   : > { %1004 = vperm.xlu1 %3405, %v889_v21   ;;  %364 = vperm.xlu0 %3404, %v249_v22  }
  0x79   : > { %1007 = vperm.xlu1 %3405, %v890_v23   ;;  %367 = vperm.xlu0 %3404, %v250_v24   ;;  %v908_v23 = vld [vmem:[%s3495_s21 + $0x160] sm:$0xff] }
  0x7a   : > { %v268_v24 = vld [vmem:[%s3490_s18 + $0x160] sm:$0xff] }
  0x7d   : > { %1010 = vperm.xlu1 %3405, %v891_v25   ;;  %370 = vperm.xlu0 %3404, %v251_v26  }
  0x81   : > { %1013 = vperm.xlu1 %3405, %v892_v27   ;;  %373 = vperm.xlu0 %3404, %v252_v28   ;;  %v909_v27 = vld [vmem:[%s3495_s21 + $0x168] sm:$0xff] }
  0x82   : > { %v269_v28 = vld [vmem:[%s3490_s18 + $0x168] sm:$0xff] }
  0x85   : > { %1016 = vperm.xlu1 %3405, %v893_v29   ;;  %376 = vperm.xlu0 %3404, %v253_v30  }
  0x89   : > { %1019 = vperm.xlu1 %3405, %v894_v32   ;;  %379 = vperm.xlu0 %3404, %v254_v33   ;;  %v910_v32 = vld [vmem:[%s3495_s21 + $0x170] sm:$0xff] }
  0x8a   : > { %v270_v33 = vld [vmem:[%s3490_s18 + $0x170] sm:$0xff] }
  0x8d   : > { %1022 = vperm.xlu1 %3405, %v895_v35   ;;  %382 = vperm.xlu0 %3404, %v255_v36  }
  0x90   : > { %v293_v40 = vpop.permute.xlu1 %292  ;;  %v290_v41 = vpop.permute.xlu0 %289 }
  0x91   : > { %1025 = vperm.xlu1 %3405, %v896_v38   ;;  %385 = vperm.xlu0 %3404, %v256_v39   ;;  %vm481_vm0 = vcmp.eq.s32.totalorder %v3755_v37, %v290_v41  ;;  %vm480_vm1 = vcmp.eq.s32.totalorder %v3750_v34, %v290_v41  ;;  %vm483_vm2 = vcmp.eq.s32.totalorder %v3755_v37, %v293_v40  ;;  %v911_v38 = vld [vmem:[%s3495_s21 + $0x178] sm:$0xff] }
  0x92   : > { %2906 = vmatprep.mubr.msk.f32.mxu0 %vm481_vm0, %v3416_v42  ;;  %vm482_vm3 = vcmp.eq.s32.totalorder %v3750_v34, %v293_v40  ;;  %v271_v39 = vld [vmem:[%s3490_s18 + $0x178] sm:$0xff] }
  0x93   : > { %2907 = vmatmul.mubr.msk.f32.vlgmr.msra.gmra.mrb[0].mxu0 %vm480_vm1, %v3416_v42 }
  0x94   : > { %v933_v45 = vpop.permute.xlu1 %932  ;;  %v930_v46 = vpop.permute.xlu0 %929  ;;  %2908 = vmatprep.mubr.msk.f32.mxu0 %vm483_vm2, %v3416_v42 }
  0x95   : > { %1028 = vperm.xlu1 %3405, %v897_v43   ;;  %388 = vperm.xlu0 %3404, %v257_v44   ;;  %vm1121_vm4 = vcmp.eq.s32.totalorder %v3755_v37, %v930_v46  ;;  %vm1120_vm5 = vcmp.eq.s32.totalorder %v3750_v34, %v930_v46  ;;  %vm1123_vm6 = vcmp.eq.s32.totalorder %v3755_v37, %v933_v45  ;;  %v912_v43 = vld [vmem:[%s3495_s21 + $0x180] sm:$0xff] }
  0x96   : > { %3034 = vmatprep.mubr.msk.f32.mxu1 %vm1121_vm4, %v3416_v42  ;;  %vm1122_vm9 = vcmp.eq.s32.totalorder %v3750_v34, %v933_v45  ;;  %v272_v44 = vld [vmem:[%s3490_s18 + $0x180] sm:$0xff] }
  0x97   : > { %2909 = vmatmul.mubr.msk.f32.gmra.mrb[2].mxu0 %vm482_vm3, %v3416_v42  ;;  %3035 = vmatmul.mubr.msk.f32.vlgmr.msra.gmra.mrb[0].mxu1 %vm1120_vm5, %v3416_v42 }
  0x98   : > { %v936_v49 = vpop.permute.xlu1 %935  ;;  %3036 = vmatprep.mubr.msk.f32.mxu1 %vm1123_vm6, %v3416_v42  ;;  %v296_v50 = vpop.permute.xlu0 %295 }
  0x99   : > { %1031 = vperm.xlu1 %3405, %v898_v47   ;;  %391 = vperm.xlu0 %3404, %v258_v48   ;;  %vm485_vm7 = vcmp.eq.s32.totalorder %v3755_v37, %v296_v50  ;;  %vm484_vm8 = vcmp.eq.s32.totalorder %v3750_v34, %v296_v50  ;;  %vm1125_vm10 = vcmp.eq.s32.totalorder %v3755_v37, %v936_v49  ;;  %v913_v47 = vld [vmem:[%s3495_s21 + $0x188] sm:$0xff] }
  0x9a   : > { %2910 = vmatprep.mubr.msk.f32.mxu0 %vm485_vm7, %v3416_v42  ;;  %vm1124_vm13 = vcmp.eq.s32.totalorder %v3750_v34, %v936_v49  ;;  %v273_v48 = vld [vmem:[%s3490_s18 + $0x188] sm:$0xff] }
  0x9b   : > { %2911 = vmatmul.mubr.msk.f32.gmra.mrb[4].mxu0 %vm484_vm8, %v3416_v42  ;;  %3037 = vmatmul.mubr.msk.f32.gmra.mrb[2].mxu1 %vm1122_vm9, %v3416_v42 }
  0x9c   : > { %v939_v53 = vpop.permute.xlu1 %938  ;;  %3038 = vmatprep.mubr.msk.f32.mxu1 %vm1125_vm10, %v3416_v42  ;;  %v299_v54 = vpop.permute.xlu0 %298 }
  0x9d   : > { %1034 = vperm.xlu1 %3405, %v899_v51   ;;  %394 = vperm.xlu0 %3404, %v259_v52   ;;  %vm487_vm11 = vcmp.eq.s32.totalorder %v3755_v37, %v299_v54  ;;  %vm486_vm12 = vcmp.eq.s32.totalorder %v3750_v34, %v299_v54  ;;  %vm1127_vm14 = vcmp.eq.s32.totalorder %v3755_v37, %v939_v53  ;;  %v914_v51 = vld [vmem:[%s3495_s21 + $0x190] sm:$0xff] }
  0x9e   : > { %2912 = vmatprep.mubr.msk.f32.mxu0 %vm487_vm11, %v3416_v42  ;;  %vm1126_vm1 = vcmp.eq.s32.totalorder %v3750_v34, %v939_v53  ;;  %v274_v52 = vld [vmem:[%s3490_s18 + $0x190] sm:$0xff] }
  0x9f   : > { %2913 = vmatmul.mubr.msk.f32.gmra.mrb[6].mxu0 %vm486_vm12, %v3416_v42  ;;  %3039 = vmatmul.mubr.msk.f32.gmra.mrb[4].mxu1 %vm1124_vm13, %v3416_v42 }
  0xa0   : > { %v942_v57 = vpop.permute.xlu1 %941  ;;  %3040 = vmatprep.mubr.msk.f32.mxu1 %vm1127_vm14, %v3416_v42  ;;  %v302_v58 = vpop.permute.xlu0 %301 }
  0xa1   : > { %1037 = vperm.xlu1 %3405, %v900_v55   ;;  %397 = vperm.xlu0 %3404, %v260_v56   ;;  %vm489_vm15 = vcmp.eq.s32.totalorder %v3755_v37, %v302_v58  ;;  %vm488_vm0 = vcmp.eq.s32.totalorder %v3750_v34, %v302_v58  ;;  %vm1129_vm2 = vcmp.eq.s32.totalorder %v3755_v37, %v942_v57  ;;  %v915_v55 = vld [vmem:[%s3495_s21 + $0x198] sm:$0xff] }
  0xa2   : > { %2914 = vmatprep.mubr.msk.f32.mxu0 %vm489_vm15, %v3416_v42  ;;  %vm1128_vm5 = vcmp.eq.s32.totalorder %v3750_v34, %v942_v57  ;;  %v275_v56 = vld [vmem:[%s3490_s18 + $0x198] sm:$0xff] }
  0xa3   : > { %2915 = vmatmul.mubr.msk.f32.gmra.mrb[8].mxu0 %vm488_vm0, %v3416_v42  ;;  %3041 = vmatmul.mubr.msk.f32.gmra.mrb[6].mxu1 %vm1126_vm1, %v3416_v42 }
  0xa4   : > { %v945_v61 = vpop.permute.xlu1 %944  ;;  %3042 = vmatprep.mubr.msk.f32.mxu1 %vm1129_vm2, %v3416_v42  ;;  %v305_v62 = vpop.permute.xlu0 %304 }
  0xa5   : > { %1040 = vperm.xlu1 %3405, %v901_v59   ;;  %400 = vperm.xlu0 %3404, %v261_v60   ;;  %vm491_vm3 = vcmp.eq.s32.totalorder %v3755_v37, %v305_v62  ;;  %vm490_vm4 = vcmp.eq.s32.totalorder %v3750_v34, %v305_v62  ;;  %vm1131_vm6 = vcmp.eq.s32.totalorder %v3755_v37, %v945_v61  ;;  %v916_v59 = vld [vmem:[%s3495_s21 + $0x1a0] sm:$0xff] }
  0xa6   : > { %2916 = vmatprep.mubr.msk.f32.mxu0 %vm491_vm3, %v3416_v42  ;;  %vm1130_vm9 = vcmp.eq.s32.totalorder %v3750_v34, %v945_v61  ;;  %v276_v60 = vld [vmem:[%s3490_s18 + $0x1a0] sm:$0xff] }
  0xa7   : > { %2917 = vmatmul.mubr.msk.f32.gmra.mrb[10].mxu0 %vm490_vm4, %v3416_v42  ;;  %3043 = vmatmul.mubr.msk.f32.gmra.mrb[8].mxu1 %vm1128_vm5, %v3416_v42 }
  0xa8   : > { %v948_v1 = vpop.permute.xlu1 %947  ;;  %3044 = vmatprep.mubr.msk.f32.mxu1 %vm1131_vm6, %v3416_v42  ;;  %v308_v2 = vpop.permute.xlu0 %307 }
  0xa9   : > { %1043 = vperm.xlu1 %3405, %v902_v63   ;;  %403 = vperm.xlu0 %3404, %v262_v0   ;;  %vm493_vm7 = vcmp.eq.s32.totalorder %v3755_v37, %v308_v2  ;;  %vm492_vm8 = vcmp.eq.s32.totalorder %v3750_v34, %v308_v2  ;;  %vm1133_vm10 = vcmp.eq.s32.totalorder %v3755_v37, %v948_v1  ;;  %v917_v63 = vld [vmem:[%s3495_s21 + $0x1a8] sm:$0xff] }
  0xaa   : > { %2918 = vmatprep.mubr.msk.f32.mxu0 %vm493_vm7, %v3416_v42  ;;  %vm1132_vm13 = vcmp.eq.s32.totalorder %v3750_v34, %v948_v1  ;;  %v277_v0 = vld [vmem:[%s3490_s18 + $0x1a8] sm:$0xff] }
  0xab   : > { %2919 = vmatmul.mubr.msk.f32.gmra.mrb[12].mxu0 %vm492_vm8, %v3416_v42  ;;  %3045 = vmatmul.mubr.msk.f32.gmra.mrb[10].mxu1 %vm1130_vm9, %v3416_v42 }
  0xac   : > { %v951_v5 = vpop.permute.xlu1 %950  ;;  %3046 = vmatprep.mubr.msk.f32.mxu1 %vm1133_vm10, %v3416_v42  ;;  %v311_v6 = vpop.permute.xlu0 %310 }
  0xad   : > { %1046 = vperm.xlu1 %3405, %v903_v3   ;;  %406 = vperm.xlu0 %3404, %v263_v4   ;;  %vm495_vm11 = vcmp.eq.s32.totalorder %v3755_v37, %v311_v6  ;;  %vm494_vm12 = vcmp.eq.s32.totalorder %v3750_v34, %v311_v6  ;;  %vm1135_vm14 = vcmp.eq.s32.totalorder %v3755_v37, %v951_v5  ;;  %v918_v3 = vld [vmem:[%s3495_s21 + $0x1b0] sm:$0xff] }
  0xae   : > { %2920 = vmatprep.mubr.msk.f32.mxu0 %vm495_vm11, %v3416_v42  ;;  %vm1134_vm1 = vcmp.eq.s32.totalorder %v3750_v34, %v951_v5  ;;  %v278_v4 = vld [vmem:[%s3490_s18 + $0x1b0] sm:$0xff] }
  0xaf   : > { %2921 = vmatmul.mubr.msk.f32.gmra.mrb[14].mxu0 %vm494_vm12, %v3416_v42  ;;  %3047 = vmatmul.mubr.msk.f32.gmra.mrb[12].mxu1 %vm1132_vm13, %v3416_v42 }
  0xb0   : > { %v954_v9 = vpop.permute.xlu1 %953  ;;  %3048 = vmatprep.mubr.msk.f32.mxu1 %vm1135_vm14, %v3416_v42  ;;  %v314_v10 = vpop.permute.xlu0 %313 }
  0xb1   : > { %1049 = vperm.xlu1 %3405, %v904_v7   ;;  %409 = vperm.xlu0 %3404, %v264_v8   ;;  %vm497_vm15 = vcmp.eq.s32.totalorder %v3755_v37, %v314_v10  ;;  %vm496_vm0 = vcmp.eq.s32.totalorder %v3750_v34, %v314_v10  ;;  %vm1137_vm2 = vcmp.eq.s32.totalorder %v3755_v37, %v954_v9  ;;  %v919_v7 = vld [vmem:[%s3495_s21 + $0x1b8] sm:$0xff] }
  0xb2   : > { %2922 = vmatprep.mubr.msk.f32.mxu0 %vm497_vm15, %v3416_v42  ;;  %vm1136_vm5 = vcmp.eq.s32.totalorder %v3750_v34, %v954_v9  ;;  %v279_v8 = vld [vmem:[%s3490_s18 + $0x1b8] sm:$0xff] }
  0xb3   : > { %2923 = vmatmul.mubr.msk.f32.gmra.mrb[16].mxu0 %vm496_vm0, %v3416_v42  ;;  %3049 = vmatmul.mubr.msk.f32.gmra.mrb[14].mxu1 %vm1134_vm1, %v3416_v42 }
  0xb4   : > { %v957_v13 = vpop.permute.xlu1 %956  ;;  %3050 = vmatprep.mubr.msk.f32.mxu1 %vm1137_vm2, %v3416_v42  ;;  %v317_v14 = vpop.permute.xlu0 %316 }
  0xb5   : > { %1052 = vperm.xlu1 %3405, %v905_v11   ;;  %412 = vperm.xlu0 %3404, %v265_v12   ;;  %vm499_vm3 = vcmp.eq.s32.totalorder %v3755_v37, %v317_v14  ;;  %vm498_vm4 = vcmp.eq.s32.totalorder %v3750_v34, %v317_v14  ;;  %vm1139_vm6 = vcmp.eq.s32.totalorder %v3755_v37, %v957_v13  ;;  %v920_v11 = vld [vmem:[%s3495_s21 + $0x1c0] sm:$0xff] }
  0xb6   : > { %2924 = vmatprep.mubr.msk.f32.mxu0 %vm499_vm3, %v3416_v42  ;;  %vm1138_vm9 = vcmp.eq.s32.totalorder %v3750_v34, %v957_v13  ;;  %v280_v12 = vld [vmem:[%s3490_s18 + $0x1c0] sm:$0xff] }
  0xb7   : > { %2925 = vmatmul.mubr.msk.f32.gmra.mrb[18].mxu0 %vm498_vm4, %v3416_v42  ;;  %3051 = vmatmul.mubr.msk.f32.gmra.mrb[16].mxu1 %vm1136_vm5, %v3416_v42 }
  0xb8   : > { %v960_v17 = vpop.permute.xlu1 %959  ;;  %3052 = vmatprep.mubr.msk.f32.mxu1 %vm1139_vm6, %v3416_v42  ;;  %v320_v18 = vpop.permute.xlu0 %319 }
  0xb9   : > { %1055 = vperm.xlu1 %3405, %v906_v15   ;;  %415 = vperm.xlu0 %3404, %v266_v16   ;;  %vm501_vm7 = vcmp.eq.s32.totalorder %v3755_v37, %v320_v18  ;;  %vm500_vm8 = vcmp.eq.s32.totalorder %v3750_v34, %v320_v18  ;;  %vm1141_vm10 = vcmp.eq.s32.totalorder %v3755_v37, %v960_v17  ;;  %v921_v15 = vld [vmem:[%s3495_s21 + $0x1c8] sm:$0xff] }
  0xba   : > { %2926 = vmatprep.mubr.msk.f32.mxu0 %vm501_vm7, %v3416_v42  ;;  %vm1140_vm13 = vcmp.eq.s32.totalorder %v3750_v34, %v960_v17  ;;  %v281_v16 = vld [vmem:[%s3490_s18 + $0x1c8] sm:$0xff] }
  0xbb   : > { %2927 = vmatmul.mubr.msk.f32.gmra.mrb[20].mxu0 %vm500_vm8, %v3416_v42  ;;  %3053 = vmatmul.mubr.msk.f32.gmra.mrb[18].mxu1 %vm1138_vm9, %v3416_v42 }
  0xbc   : > { %v963_v21 = vpop.permute.xlu1 %962  ;;  %3054 = vmatprep.mubr.msk.f32.mxu1 %vm1141_vm10, %v3416_v42  ;;  %v323_v22 = vpop.permute.xlu0 %322 }
  0xbd   : > { %1058 = vperm.xlu1 %3405, %v907_v19   ;;  %418 = vperm.xlu0 %3404, %v267_v20   ;;  %vm503_vm11 = vcmp.eq.s32.totalorder %v3755_v37, %v323_v22  ;;  %vm502_vm12 = vcmp.eq.s32.totalorder %v3750_v34, %v323_v22  ;;  %vm1143_vm14 = vcmp.eq.s32.totalorder %v3755_v37, %v963_v21  ;;  %v922_v19 = vld [vmem:[%s3495_s21 + $0x1d0] sm:$0xff] }
  0xbe   : > { %2928 = vmatprep.mubr.msk.f32.mxu0 %vm503_vm11, %v3416_v42  ;;  %vm1142_vm1 = vcmp.eq.s32.totalorder %v3750_v34, %v963_v21  ;;  %v282_v20 = vld [vmem:[%s3490_s18 + $0x1d0] sm:$0xff] }
  0xbf   : > { %2929 = vmatmul.mubr.msk.f32.gmra.mrb[22].mxu0 %vm502_vm12, %v3416_v42  ;;  %3055 = vmatmul.mubr.msk.f32.gmra.mrb[20].mxu1 %vm1140_vm13, %v3416_v42 }
  0xc0   : > { %v966_v25 = vpop.permute.xlu1 %965  ;;  %3056 = vmatprep.mubr.msk.f32.mxu1 %vm1143_vm14, %v3416_v42  ;;  %v326_v26 = vpop.permute.xlu0 %325 }
  0xc1   : > { %1061 = vperm.xlu1 %3405, %v908_v23   ;;  %421 = vperm.xlu0 %3404, %v268_v24   ;;  %vm505_vm15 = vcmp.eq.s32.totalorder %v3755_v37, %v326_v26  ;;  %vm504_vm0 = vcmp.eq.s32.totalorder %v3750_v34, %v326_v26  ;;  %vm1145_vm2 = vcmp.eq.s32.totalorder %v3755_v37, %v966_v25  ;;  %v923_v23 = vld [vmem:[%s3495_s21 + $0x1d8] sm:$0xff] }
  0xc2   : > { %2930 = vmatprep.mubr.msk.f32.mxu0 %vm505_vm15, %v3416_v42  ;;  %vm1144_vm5 = vcmp.eq.s32.totalorder %v3750_v34, %v966_v25  ;;  %v283_v24 = vld [vmem:[%s3490_s18 + $0x1d8] sm:$0xff] }
  0xc3   : > { %2931 = vmatmul.mubr.msk.f32.gmra.mrb[24].mxu0 %vm504_vm0, %v3416_v42  ;;  %3057 = vmatmul.mubr.msk.f32.gmra.mrb[22].mxu1 %vm1142_vm1, %v3416_v42 }
  0xc4   : > { %v969_v29 = vpop.permute.xlu1 %968  ;;  %3058 = vmatprep.mubr.msk.f32.mxu1 %vm1145_vm2, %v3416_v42  ;;  %v329_v30 = vpop.permute.xlu0 %328 }
  0xc5   : > { %1064 = vperm.xlu1 %3405, %v909_v27   ;;  %424 = vperm.xlu0 %3404, %v269_v28   ;;  %vm507_vm3 = vcmp.eq.s32.totalorder %v3755_v37, %v329_v30  ;;  %vm506_vm4 = vcmp.eq.s32.totalorder %v3750_v34, %v329_v30  ;;  %vm1147_vm6 = vcmp.eq.s32.totalorder %v3755_v37, %v969_v29  ;;  %v924_v27 = vld [vmem:[%s3495_s21 + $0x1e0] sm:$0xff] }
  0xc6   : > { %2932 = vmatprep.mubr.msk.f32.mxu0 %vm507_vm3, %v3416_v42  ;;  %vm1146_vm9 = vcmp.eq.s32.totalorder %v3750_v34, %v969_v29  ;;  %v284_v28 = vld [vmem:[%s3490_s18 + $0x1e0] sm:$0xff] }
  0xc7   : > { %2933 = vmatmul.mubr.msk.f32.gmra.mrb[26].mxu0 %vm506_vm4, %v3416_v42  ;;  %3059 = vmatmul.mubr.msk.f32.gmra.mrb[24].mxu1 %vm1144_vm5, %v3416_v42 }
  0xc8   : > { %v972_v35 = vpop.permute.xlu1 %971  ;;  %3060 = vmatprep.mubr.msk.f32.mxu1 %vm1147_vm6, %v3416_v42  ;;  %v332_v36 = vpop.permute.xlu0 %331 }
  0xc9   : > { %1067 = vperm.xlu1 %3405, %v910_v32   ;;  %427 = vperm.xlu0 %3404, %v270_v33   ;;  %vm509_vm7 = vcmp.eq.s32.totalorder %v3755_v37, %v332_v36  ;;  %vm508_vm8 = vcmp.eq.s32.totalorder %v3750_v34, %v332_v36  ;;  %vm1149_vm10 = vcmp.eq.s32.totalorder %v3755_v37, %v972_v35  ;;  %v925_v32 = vld [vmem:[%s3495_s21 + $0x1e8] sm:$0xff] }
  0xca   : > { %2934 = vmatprep.mubr.msk.f32.mxu0 %vm509_vm7, %v3416_v42  ;;  %vm1148_vm13 = vcmp.eq.s32.totalorder %v3750_v34, %v972_v35  ;;  %v285_v33 = vld [vmem:[%s3490_s18 + $0x1e8] sm:$0xff] }
  0xcb   : > { %2935 = vmatmul.mubr.msk.f32.gmra.mrb[28].mxu0 %vm508_vm8, %v3416_v42  ;;  %3061 = vmatmul.mubr.msk.f32.gmra.mrb[26].mxu1 %vm1146_vm9, %v3416_v42 }
  0xcc   : > { %v975_v40 = vpop.permute.xlu1 %974  ;;  %3062 = vmatprep.mubr.msk.f32.mxu1 %vm1149_vm10, %v3416_v42  ;;  %v335_v41 = vpop.permute.xlu0 %334 }
  0xcd   : > { %vm510_vm11 = vcmp.eq.s32.totalorder %v3750_v34, %v335_v41  ;;  %vm511_vm12 = vcmp.eq.s32.totalorder %v3755_v37, %v335_v41  ;;  %1070 = vperm.xlu1 %3405, %v911_v38   ;;  %430 = vperm.xlu0 %3404, %v271_v39   ;;  %vm1151_vm14 = vcmp.eq.s32.totalorder %v3755_v37, %v975_v40  ;;  %v926_v38 = vld [vmem:[%s3495_s21 + $0x1f0] sm:$0xff] }
  0xce   : > { %2936 = vmatprep.mubr.msk.f32.mxu0 %vm511_vm12, %v3416_v42  ;;  %vm1150_vm1 = vcmp.eq.s32.totalorder %v3750_v34, %v975_v40  ;;  %v286_v39 = vld [vmem:[%s3490_s18 + $0x1f0] sm:$0xff] }
  0xcf   : > { %2937 = vmatmul.mubr.msk.f32.gmra.mrb[30].mxu0 %vm510_vm11, %v3416_v42  ;;  %3063 = vmatmul.mubr.msk.f32.gmra.mrb[28].mxu1 %vm1148_vm13, %v3416_v42 }
  0xd0   : > { %v978_v45 = vpop.permute.xlu1 %977  ;;  %3064 = vmatprep.mubr.msk.f32.mxu1 %vm1151_vm14, %v3416_v42  ;;  %v338_v46 = vpop.permute.xlu0 %337 }
  0xd1   : > { %vm512_vm15 = vcmp.eq.s32.totalorder %v3750_v34, %v338_v46  ;;  %vm513_vm0 = vcmp.eq.s32.totalorder %v3755_v37, %v338_v46  ;;  %1073 = vperm.xlu1 %3405, %v912_v43   ;;  %433 = vperm.xlu0 %3404, %v272_v44   ;;  %vm1153_vm2 = vcmp.eq.s32.totalorder %v3755_v37, %v978_v45  ;;  %v927_v43 = vld [vmem:[%s3495_s21 + $0x1f8] sm:$0xff] }
  0xd2   : > { %2938 = vmatprep.mubr.msk.f32.mxu0 %vm513_vm0, %v3416_v42  ;;  %vm1152_vm5 = vcmp.eq.s32.totalorder %v3750_v34, %v978_v45  ;;  %v287_v44 = vld [vmem:[%s3490_s18 + $0x1f8] sm:$0xff]  ;;  %s2649_s18 = sshll.u32 %s2640_s16, 2 }
  0xd3   : > { %2939 = vmatmul.mubr.msk.f32.gmra.mrb[32].mxu0 %vm512_vm15, %v3416_v42  ;;  %3065 = vmatmul.mubr.msk.f32.gmra.mrb[30].mxu1 %vm1150_vm1, %v3416_v42  ;;  %p217_p4 = scmp.lt.s32.totalorder %s2649_s18, 11 }
  0xd4   : > { %v981_v49 = vpop.permute.xlu1 %980  ;;  %3066 = vmatprep.mubr.msk.f32.mxu1 %vm1153_vm2, %v3416_v42  ;;  %v341_v50 = vpop.permute.xlu0 %340 }
  0xd5   : > { %vm514_vm3 = vcmp.eq.s32.totalorder %v3750_v34, %v341_v50  ;;  %vm515_vm4 = vcmp.eq.s32.totalorder %v3755_v37, %v341_v50  ;;  %1076 = vperm.xlu1 %3405, %v913_v47   ;;  %436 = vperm.xlu0 %3404, %v273_v48   ;;  %vm1155_vm6 = vcmp.eq.s32.totalorder %v3755_v37, %v981_v49  ;;  %s4499_s18 = smov (!%p217_p4, %s2649_s18), 11 }
  0xd6   : > { %2940 = vmatprep.mubr.msk.f32.mxu0 %vm515_vm4, %v3416_v42  ;;  %vm1154_vm9 = vcmp.eq.s32.totalorder %v3750_v34, %v981_v49  ;;  %s219_s20 = scalar_lea.vmem %s4495_s4, %s4499_s18 }
  0xd7   : > { %2941 = vmatmul.mubr.msk.f32.gmra.mrb[34].mxu0 %vm514_vm3, %v3416_v42  ;;  %3067 = vmatmul.mubr.msk.f32.gmra.mrb[32].mxu1 %vm1152_vm5, %v3416_v42 }
  0xd8   : > { %v984_v53 = vpop.permute.xlu1 %983  ;;  %3068 = vmatprep.mubr.msk.f32.mxu1 %vm1155_vm6, %v3416_v42  ;;  %v344_v54 = vpop.permute.xlu0 %343 }
  0xd9   : > { %vm516_vm7 = vcmp.eq.s32.totalorder %v3750_v34, %v344_v54  ;;  %vm517_vm8 = vcmp.eq.s32.totalorder %v3755_v37, %v344_v54  ;;  %1079 = vperm.xlu1 %3405, %v914_v51   ;;  %439 = vperm.xlu0 %3404, %v274_v52   ;;  %vm1157_vm10 = vcmp.eq.s32.totalorder %v3755_v37, %v984_v53 }
  0xda   : > { %2942 = vmatprep.mubr.msk.f32.mxu0 %vm517_vm8, %v3416_v42  ;;  %vm1156_vm13 = vcmp.eq.s32.totalorder %v3750_v34, %v984_v53 }
  0xdb   : > { %2943 = vmatmul.mubr.msk.f32.gmra.mrb[36].mxu0 %vm516_vm7, %v3416_v42  ;;  %3069 = vmatmul.mubr.msk.f32.gmra.mrb[34].mxu1 %vm1154_vm9, %v3416_v42 }
  0xdc   : > { %v987_v57 = vpop.permute.xlu1 %986  ;;  %3070 = vmatprep.mubr.msk.f32.mxu1 %vm1157_vm10, %v3416_v42  ;;  %v347_v58 = vpop.permute.xlu0 %346 }
  0xdd   : > { %vm518_vm11 = vcmp.eq.s32.totalorder %v3750_v34, %v347_v58  ;;  %vm519_vm12 = vcmp.eq.s32.totalorder %v3755_v37, %v347_v58  ;;  %1082 = vperm.xlu1 %3405, %v915_v55   ;;  %442 = vperm.xlu0 %3404, %v275_v56   ;;  %vm1159_vm14 = vcmp.eq.s32.totalorder %v3755_v37, %v987_v57 }
  0xde   : > { %2944 = vmatprep.mubr.msk.f32.mxu0 %vm519_vm12, %v3416_v42  ;;  %vm1158_vm1 = vcmp.eq.s32.totalorder %v3750_v34, %v987_v57 }
  0xdf   : > { %2945 = vmatmul.mubr.msk.f32.gmra.mrb[38].mxu0 %vm518_vm11, %v3416_v42  ;;  %3071 = vmatmul.mubr.msk.f32.gmra.mrb[36].mxu1 %vm1156_vm13, %v3416_v42 }
  0xe0   : > { %v990_v61 = vpop.permute.xlu1 %989  ;;  %3072 = vmatprep.mubr.msk.f32.mxu1 %vm1159_vm14, %v3416_v42  ;;  %v350_v62 = vpop.permute.xlu0 %349 }
  0xe1   : > { %vm520_vm15 = vcmp.eq.s32.totalorder %v3750_v34, %v350_v62  ;;  %vm521_vm0 = vcmp.eq.s32.totalorder %v3755_v37, %v350_v62  ;;  %1085 = vperm.xlu1 %3405, %v916_v59   ;;  %445 = vperm.xlu0 %3404, %v276_v60   ;;  %vm1161_vm2 = vcmp.eq.s32.totalorder %v3755_v37, %v990_v61 }
  0xe2   : > { %2946 = vmatprep.mubr.msk.f32.mxu0 %vm521_vm0, %v3416_v42  ;;  %vm1160_vm5 = vcmp.eq.s32.totalorder %v3750_v34, %v990_v61 }
  0xe3   : > { %2947 = vmatmul.mubr.msk.f32.gmra.mrb[40].mxu0 %vm520_vm15, %v3416_v42  ;;  %3073 = vmatmul.mubr.msk.f32.gmra.mrb[38].mxu1 %vm1158_vm1, %v3416_v42 }
  0xe4   : > { %v993_v1 = vpop.permute.xlu1 %992  ;;  %3074 = vmatprep.mubr.msk.f32.mxu1 %vm1161_vm2, %v3416_v42  ;;  %v353_v2 = vpop.permute.xlu0 %352 }
  0xe5   : > { %vm522_vm3 = vcmp.eq.s32.totalorder %v3750_v34, %v353_v2  ;;  %vm523_vm4 = vcmp.eq.s32.totalorder %v3755_v37, %v353_v2  ;;  %1088 = vperm.xlu1 %3405, %v917_v63   ;;  %448 = vperm.xlu0 %3404, %v277_v0   ;;  %vm1163_vm6 = vcmp.eq.s32.totalorder %v3755_v37, %v993_v1 }
  0xe6   : > { %2948 = vmatprep.mubr.msk.f32.mxu0 %vm523_vm4, %v3416_v42  ;;  %vm1162_vm9 = vcmp.eq.s32.totalorder %v3750_v34, %v993_v1 }
  0xe7   : > { %2949 = vmatmul.mubr.msk.f32.gmra.mrb[42].mxu0 %vm522_vm3, %v3416_v42  ;;  %3075 = vmatmul.mubr.msk.f32.gmra.mrb[40].mxu1 %vm1160_vm5, %v3416_v42 }
  0xe8   : > { %v996_v5 = vpop.permute.xlu1 %995  ;;  %3076 = vmatprep.mubr.msk.f32.mxu1 %vm1163_vm6, %v3416_v42  ;;  %v356_v6 = vpop.permute.xlu0 %355 }
  0xe9   : > { %vm524_vm7 = vcmp.eq.s32.totalorder %v3750_v34, %v356_v6  ;;  %vm525_vm8 = vcmp.eq.s32.totalorder %v3755_v37, %v356_v6  ;;  %1091 = vperm.xlu1 %3405, %v918_v3   ;;  %451 = vperm.xlu0 %3404, %v278_v4   ;;  %vm1165_vm10 = vcmp.eq.s32.totalorder %v3755_v37, %v996_v5 }
  0xea   : > { %2950 = vmatprep.mubr.msk.f32.mxu0 %vm525_vm8, %v3416_v42  ;;  %vm1164_vm13 = vcmp.eq.s32.totalorder %v3750_v34, %v996_v5 }
  0xeb   : > { %2951 = vmatmul.mubr.msk.f32.gmra.mrb[44].mxu0 %vm524_vm7, %v3416_v42  ;;  %3077 = vmatmul.mubr.msk.f32.gmra.mrb[42].mxu1 %vm1162_vm9, %v3416_v42 }
  0xec   : > { %v999_v9 = vpop.permute.xlu1 %998  ;;  %3078 = vmatprep.mubr.msk.f32.mxu1 %vm1165_vm10, %v3416_v42  ;;  %v359_v10 = vpop.permute.xlu0 %358 }
  0xed   : > { %vm526_vm11 = vcmp.eq.s32.totalorder %v3750_v34, %v359_v10  ;;  %vm527_vm12 = vcmp.eq.s32.totalorder %v3755_v37, %v359_v10  ;;  %1094 = vperm.xlu1 %3405, %v919_v7   ;;  %454 = vperm.xlu0 %3404, %v279_v8   ;;  %vm1167_vm14 = vcmp.eq.s32.totalorder %v3755_v37, %v999_v9 }
  0xee   : > { %2952 = vmatprep.mubr.msk.f32.mxu0 %vm527_vm12, %v3416_v42  ;;  %vm1166_vm1 = vcmp.eq.s32.totalorder %v3750_v34, %v999_v9 }
  0xef   : > { %2953 = vmatmul.mubr.msk.f32.gmra.mrb[46].mxu0 %vm526_vm11, %v3416_v42  ;;  %3079 = vmatmul.mubr.msk.f32.gmra.mrb[44].mxu1 %vm1164_vm13, %v3416_v42 }
  0xf0   : > { %v1002_v13 = vpop.permute.xlu1 %1001  ;;  %3080 = vmatprep.mubr.msk.f32.mxu1 %vm1167_vm14, %v3416_v42  ;;  %v362_v14 = vpop.permute.xlu0 %361 }
  0xf1   : > { %vm528_vm15 = vcmp.eq.s32.totalorder %v3750_v34, %v362_v14  ;;  %vm529_vm0 = vcmp.eq.s32.totalorder %v3755_v37, %v362_v14  ;;  %1097 = vperm.xlu1 %3405, %v920_v11   ;;  %457 = vperm.xlu0 %3404, %v280_v12   ;;  %vm1169_vm2 = vcmp.eq.s32.totalorder %v3755_v37, %v1002_v13 }
  0xf2   : > { %2954 = vmatprep.mubr.msk.f32.mxu0 %vm529_vm0, %v3416_v42  ;;  %vm1168_vm5 = vcmp.eq.s32.totalorder %v3750_v34, %v1002_v13 }
  0xf3   : > { %2955 = vmatmul.mubr.msk.f32.gmra.mrb[48].mxu0 %vm528_vm15, %v3416_v42  ;;  %3081 = vmatmul.mubr.msk.f32.gmra.mrb[46].mxu1 %vm1166_vm1, %v3416_v42 }
  0xf4   : > { %v1005_v17 = vpop.permute.xlu1 %1004  ;;  %3082 = vmatprep.mubr.msk.f32.mxu1 %vm1169_vm2, %v3416_v42  ;;  %v365_v18 = vpop.permute.xlu0 %364 }
  0xf5   : > { %vm530_vm3 = vcmp.eq.s32.totalorder %v3750_v34, %v365_v18  ;;  %vm531_vm4 = vcmp.eq.s32.totalorder %v3755_v37, %v365_v18  ;;  %1100 = vperm.xlu1 %3405, %v921_v15   ;;  %460 = vperm.xlu0 %3404, %v281_v16   ;;  %vm1171_vm6 = vcmp.eq.s32.totalorder %v3755_v37, %v1005_v17 }
  0xf6   : > { %2956 = vmatprep.mubr.msk.f32.mxu0 %vm531_vm4, %v3416_v42  ;;  %vm1170_vm9 = vcmp.eq.s32.totalorder %v3750_v34, %v1005_v17 }
  0xf7   : > { %2957 = vmatmul.mubr.msk.f32.gmra.mrb[50].mxu0 %vm530_vm3, %v3416_v42  ;;  %3083 = vmatmul.mubr.msk.f32.gmra.mrb[48].mxu1 %vm1168_vm5, %v3416_v42 }
  0xf8   : > { %v1008_v21 = vpop.permute.xlu1 %1007  ;;  %3084 = vmatprep.mubr.msk.f32.mxu1 %vm1171_vm6, %v3416_v42  ;;  %v368_v22 = vpop.permute.xlu0 %367 }
  0xf9   : > { %vm532_vm7 = vcmp.eq.s32.totalorder %v3750_v34, %v368_v22  ;;  %vm533_vm8 = vcmp.eq.s32.totalorder %v3755_v37, %v368_v22  ;;  %1103 = vperm.xlu1 %3405, %v922_v19   ;;  %463 = vperm.xlu0 %3404, %v282_v20   ;;  %vm1173_vm10 = vcmp.eq.s32.totalorder %v3755_v37, %v1008_v21 }
  0xfa   : > { %2958 = vmatprep.mubr.msk.f32.mxu0 %vm533_vm8, %v3416_v42  ;;  %vm1172_vm13 = vcmp.eq.s32.totalorder %v3750_v34, %v1008_v21 }
  0xfb   : > { %2959 = vmatmul.mubr.msk.f32.gmra.mrb[52].mxu0 %vm532_vm7, %v3416_v42  ;;  %3085 = vmatmul.mubr.msk.f32.gmra.mrb[50].mxu1 %vm1170_vm9, %v3416_v42 }
  0xfc   : > { %v1011_v25 = vpop.permute.xlu1 %1010  ;;  %3086 = vmatprep.mubr.msk.f32.mxu1 %vm1173_vm10, %v3416_v42  ;;  %v371_v26 = vpop.permute.xlu0 %370 }
  0xfd   : > { %vm534_vm11 = vcmp.eq.s32.totalorder %v3750_v34, %v371_v26  ;;  %vm535_vm12 = vcmp.eq.s32.totalorder %v3755_v37, %v371_v26  ;;  %1106 = vperm.xlu1 %3405, %v923_v23   ;;  %466 = vperm.xlu0 %3404, %v283_v24   ;;  %vm1175_vm14 = vcmp.eq.s32.totalorder %v3755_v37, %v1011_v25 }
  0xfe   : > { %2960 = vmatprep.mubr.msk.f32.mxu0 %vm535_vm12, %v3416_v42  ;;  %vm1174_vm1 = vcmp.eq.s32.totalorder %v3750_v34, %v1011_v25 }
  0xff   : > { %2961 = vmatmul.mubr.msk.f32.gmra.mrb[54].mxu0 %vm534_vm11, %v3416_v42  ;;  %3087 = vmatmul.mubr.msk.f32.gmra.mrb[52].mxu1 %vm1172_vm13, %v3416_v42 }
 0x100   : > { %v1014_v29 = vpop.permute.xlu1 %1013  ;;  %3088 = vmatprep.mubr.msk.f32.mxu1 %vm1175_vm14, %v3416_v42  ;;  %v374_v30 = vpop.permute.xlu0 %373 }
 0x101   : > { %vm536_vm15 = vcmp.eq.s32.totalorder %v3750_v34, %v374_v30  ;;  %vm537_vm0 = vcmp.eq.s32.totalorder %v3755_v37, %v374_v30  ;;  %1109 = vperm.xlu1 %3405, %v924_v27   ;;  %469 = vperm.xlu0 %3404, %v284_v28   ;;  %vm1177_vm2 = vcmp.eq.s32.totalorder %v3755_v37, %v1014_v29 }
 0x102   : > { %2962 = vmatprep.mubr.msk.f32.mxu0 %vm537_vm0, %v3416_v42  ;;  %vm1176_vm5 = vcmp.eq.s32.totalorder %v3750_v34, %v1014_v29 }
 0x103   : > { %2963 = vmatmul.mubr.msk.f32.gmra.mrb[56].mxu0 %vm536_vm15, %v3416_v42  ;;  %3089 = vmatmul.mubr.msk.f32.gmra.mrb[54].mxu1 %vm1174_vm1, %v3416_v42 }
 0x104   : > { %v1017_v35 = vpop.permute.xlu1 %1016  ;;  %3090 = vmatprep.mubr.msk.f32.mxu1 %vm1177_vm2, %v3416_v42  ;;  %v377_v36 = vpop.permute.xlu0 %376 }
 0x105   : > { %vm538_vm3 = vcmp.eq.s32.totalorder %v3750_v34, %v377_v36  ;;  %vm539_vm4 = vcmp.eq.s32.totalorder %v3755_v37, %v377_v36  ;;  %1112 = vperm.xlu1 %3405, %v925_v32   ;;  %472 = vperm.xlu0 %3404, %v285_v33   ;;  %vm1179_vm6 = vcmp.eq.s32.totalorder %v3755_v37, %v1017_v35 }
 0x106   : > { %2964 = vmatprep.mubr.msk.f32.mxu0 %vm539_vm4, %v3416_v42  ;;  %vm1178_vm9 = vcmp.eq.s32.totalorder %v3750_v34, %v1017_v35 }
 0x107   : > { %2965 = vmatmul.mubr.msk.f32.gmra.mrb[58].mxu0 %vm538_vm3, %v3416_v42  ;;  %3091 = vmatmul.mubr.msk.f32.gmra.mrb[56].mxu1 %vm1176_vm5, %v3416_v42 }
 0x108   : > { %v1020_v40 = vpop.permute.xlu1 %1019  ;;  %3092 = vmatprep.mubr.msk.f32.mxu1 %vm1179_vm6, %v3416_v42  ;;  %v380_v41 = vpop.permute.xlu0 %379 }
 0x109   : > { %vm540_vm7 = vcmp.eq.s32.totalorder %v3750_v34, %v380_v41  ;;  %vm541_vm8 = vcmp.eq.s32.totalorder %v3755_v37, %v380_v41  ;;  %1115 = vperm.xlu1 %3405, %v926_v38   ;;  %475 = vperm.xlu0 %3404, %v286_v39   ;;  %vm1181_vm10 = vcmp.eq.s32.totalorder %v3755_v37, %v1020_v40 }
 0x10a   : > { %2966 = vmatprep.mubr.msk.f32.mxu0 %vm541_vm8, %v3416_v42  ;;  %vm1180_vm13 = vcmp.eq.s32.totalorder %v3750_v34, %v1020_v40 }
 0x10b   : > { %2967 = vmatmul.mubr.msk.f32.gmra.mrb[60].mxu0 %vm540_vm7, %v3416_v42  ;;  %3093 = vmatmul.mubr.msk.f32.gmra.mrb[58].mxu1 %vm1178_vm9, %v3416_v42 }
 0x10c   : > { %v1023_v45 = vpop.permute.xlu1 %1022  ;;  %3094 = vmatprep.mubr.msk.f32.mxu1 %vm1181_vm10, %v3416_v42  ;;  %v383_v46 = vpop.permute.xlu0 %382 }
 0x10d   : > { %vm542_vm11 = vcmp.eq.s32.totalorder %v3750_v34, %v383_v46  ;;  %vm543_vm12 = vcmp.eq.s32.totalorder %v3755_v37, %v383_v46  ;;  %1118 = vperm.xlu1 %3405, %v927_v43   ;;  %478 = vperm.xlu0 %3404, %v287_v44   ;;  %vm1183_vm14 = vcmp.eq.s32.totalorder %v3755_v37, %v1023_v45 }
 0x10e   : > { %2968 = vmatprep.mubr.msk.f32.mxu0 %vm543_vm12, %v3416_v42  ;;  %vm1182_vm1 = vcmp.eq.s32.totalorder %v3750_v34, %v1023_v45 }
 0x10f   : > { %2969 = vmatmul.mubr.msk.f32.gmra.mrb[62].mxu0 %vm542_vm11, %v3416_v42  ;;  %3095 = vmatmul.mubr.msk.f32.gmra.mrb[60].mxu1 %vm1180_vm13, %v3416_v42 }
 0x110   : > { %v1026_v47 = vpop.permute.xlu1 %1025  ;;  %3096 = vmatprep.mubr.msk.f32.mxu1 %vm1183_vm14, %v3416_v42  ;;  %v386_v48 = vpop.permute.xlu0 %385 }
 0x111   : > { %vm544_vm15 = vcmp.eq.s32.totalorder %v3750_v34, %v386_v48  ;;  %vm545_vm0 = vcmp.eq.s32.totalorder %v3755_v37, %v386_v48  ;;  %vm1185_vm2 = vcmp.eq.s32.totalorder %v3755_v37, %v1026_v47  ;;  %vm1184_vm5 = vcmp.eq.s32.totalorder %v3750_v34, %v1026_v47 }
 0x112   : > { %2970 = vmatprep.mubr.msk.f32.mxu0 %vm545_vm0, %v3416_v42 }
 0x113   : > { %2971 = vmatmul.mubr.msk.f32.gmra.mrb[64].mxu0 %vm544_vm15, %v3416_v42  ;;  %3097 = vmatmul.mubr.msk.f32.gmra.mrb[62].mxu1 %vm1182_vm1, %v3416_v42 }
 0x114   : > { %v1029_v49 = vpop.permute.xlu1 %1028  ;;  %3098 = vmatprep.mubr.msk.f32.mxu1 %vm1185_vm2, %v3416_v42  ;;  %v389_v50 = vpop.permute.xlu0 %388 }
 0x115   : > { %vm546_vm3 = vcmp.eq.s32.totalorder %v3750_v34, %v389_v50  ;;  %vm547_vm4 = vcmp.eq.s32.totalorder %v3755_v37, %v389_v50  ;;  %vm1187_vm6 = vcmp.eq.s32.totalorder %v3755_v37, %v1029_v49  ;;  %vm1186_vm9 = vcmp.eq.s32.totalorder %v3750_v34, %v1029_v49 }
 0x116   : > { %2972 = vmatprep.mubr.msk.f32.mxu0 %vm547_vm4, %v3416_v42 }
 0x117   : > { %2973 = vmatmul.mubr.msk.f32.gmra.mrb[66].mxu0 %vm546_vm3, %v3416_v42  ;;  %3099 = vmatmul.mubr.msk.f32.gmra.mrb[64].mxu1 %vm1184_vm5, %v3416_v42 }
 0x118   : > { %v1032_v51 = vpop.permute.xlu1 %1031  ;;  %3100 = vmatprep.mubr.msk.f32.mxu1 %vm1187_vm6, %v3416_v42  ;;  %v392_v52 = vpop.permute.xlu0 %391 }
 0x119   : > { %vm548_vm7 = vcmp.eq.s32.totalorder %v3750_v34, %v392_v52  ;;  %vm549_vm8 = vcmp.eq.s32.totalorder %v3755_v37, %v392_v52  ;;  %vm1189_vm10 = vcmp.eq.s32.totalorder %v3755_v37, %v1032_v51  ;;  %vm1188_vm13 = vcmp.eq.s32.totalorder %v3750_v34, %v1032_v51 }
 0x11a   : > { %2974 = vmatprep.mubr.msk.f32.mxu0 %vm549_vm8, %v3416_v42 }
 0x11b   : > { %2975 = vmatmul.mubr.msk.f32.gmra.mrb[68].mxu0 %vm548_vm7, %v3416_v42  ;;  %3101 = vmatmul.mubr.msk.f32.gmra.mrb[66].mxu1 %vm1186_vm9, %v3416_v42 }
 0x11c   : > { %v1035_v53 = vpop.permute.xlu1 %1034  ;;  %3102 = vmatprep.mubr.msk.f32.mxu1 %vm1189_vm10, %v3416_v42  ;;  %v395_v54 = vpop.permute.xlu0 %394 }
 0x11d   : > { %vm550_vm11 = vcmp.eq.s32.totalorder %v3750_v34, %v395_v54  ;;  %vm551_vm12 = vcmp.eq.s32.totalorder %v3755_v37, %v395_v54  ;;  %vm1191_vm14 = vcmp.eq.s32.totalorder %v3755_v37, %v1035_v53  ;;  %vm1190_vm1 = vcmp.eq.s32.totalorder %v3750_v34, %v1035_v53 }
 0x11e   : > { %2976 = vmatprep.mubr.msk.f32.mxu0 %vm551_vm12, %v3416_v42 }
 0x11f   : > { %2977 = vmatmul.mubr.msk.f32.gmra.mrb[70].mxu0 %vm550_vm11, %v3416_v42  ;;  %3103 = vmatmul.mubr.msk.f32.gmra.mrb[68].mxu1 %vm1188_vm13, %v3416_v42 }
 0x120   : > { %v1038_v55 = vpop.permute.xlu1 %1037  ;;  %3104 = vmatprep.mubr.msk.f32.mxu1 %vm1191_vm14, %v3416_v42  ;;  %v398_v56 = vpop.permute.xlu0 %397 }
 0x121   : > { %vm552_vm15 = vcmp.eq.s32.totalorder %v3750_v34, %v398_v56  ;;  %vm553_vm0 = vcmp.eq.s32.totalorder %v3755_v37, %v398_v56  ;;  %vm1193_vm2 = vcmp.eq.s32.totalorder %v3755_v37, %v1038_v55  ;;  %vm1192_vm5 = vcmp.eq.s32.totalorder %v3750_v34, %v1038_v55 }
 0x122   : > { %2978 = vmatprep.mubr.msk.f32.mxu0 %vm553_vm0, %v3416_v42 }
 0x123   : > { %2979 = vmatmul.mubr.msk.f32.gmra.mrb[72].mxu0 %vm552_vm15, %v3416_v42  ;;  %3105 = vmatmul.mubr.msk.f32.gmra.mrb[70].mxu1 %vm1190_vm1, %v3416_v42 }
 0x124   : > { %v1041_v57 = vpop.permute.xlu1 %1040  ;;  %3106 = vmatprep.mubr.msk.f32.mxu1 %vm1193_vm2, %v3416_v42  ;;  %v401_v58 = vpop.permute.xlu0 %400 }
 0x125   : > { %vm554_vm3 = vcmp.eq.s32.totalorder %v3750_v34, %v401_v58  ;;  %vm555_vm4 = vcmp.eq.s32.totalorder %v3755_v37, %v401_v58  ;;  %vm1195_vm6 = vcmp.eq.s32.totalorder %v3755_v37, %v1041_v57  ;;  %vm1194_vm9 = vcmp.eq.s32.totalorder %v3750_v34, %v1041_v57 }
 0x126   : > { %2980 = vmatprep.mubr.msk.f32.mxu0 %vm555_vm4, %v3416_v42 }
 0x127   : > { %2981 = vmatmul.mubr.msk.f32.gmra.mrb[74].mxu0 %vm554_vm3, %v3416_v42  ;;  %3107 = vmatmul.mubr.msk.f32.gmra.mrb[72].mxu1 %vm1192_vm5, %v3416_v42 }
 0x128   : > { %v1044_v59 = vpop.permute.xlu1 %1043  ;;  %3108 = vmatprep.mubr.msk.f32.mxu1 %vm1195_vm6, %v3416_v42  ;;  %v404_v60 = vpop.permute.xlu0 %403 }
 0x129   : > { %vm556_vm7 = vcmp.eq.s32.totalorder %v3750_v34, %v404_v60  ;;  %vm557_vm8 = vcmp.eq.s32.totalorder %v3755_v37, %v404_v60  ;;  %vm1197_vm10 = vcmp.eq.s32.totalorder %v3755_v37, %v1044_v59  ;;  %vm1196_vm13 = vcmp.eq.s32.totalorder %v3750_v34, %v1044_v59 }
 0x12a   : > { %2982 = vmatprep.mubr.msk.f32.mxu0 %vm557_vm8, %v3416_v42 }
 0x12b   : > { %2983 = vmatmul.mubr.msk.f32.gmra.mrb[76].mxu0 %vm556_vm7, %v3416_v42  ;;  %3109 = vmatmul.mubr.msk.f32.gmra.mrb[74].mxu1 %vm1194_vm9, %v3416_v42 }
 0x12c   : > { %v1047_v61 = vpop.permute.xlu1 %1046  ;;  %3110 = vmatprep.mubr.msk.f32.mxu1 %vm1197_vm10, %v3416_v42  ;;  %v407_v62 = vpop.permute.xlu0 %406 }
 0x12d   : > { %vm558_vm11 = vcmp.eq.s32.totalorder %v3750_v34, %v407_v62  ;;  %vm559_vm12 = vcmp.eq.s32.totalorder %v3755_v37, %v407_v62  ;;  %vm1199_vm14 = vcmp.eq.s32.totalorder %v3755_v37, %v1047_v61  ;;  %vm1198_vm1 = vcmp.eq.s32.totalorder %v3750_v34, %v1047_v61 }
 0x12e   : > { %2984 = vmatprep.mubr.msk.f32.mxu0 %vm559_vm12, %v3416_v42 }
 0x12f   : > { %2985 = vmatmul.mubr.msk.f32.gmra.mrb[78].mxu0 %vm558_vm11, %v3416_v42  ;;  %3111 = vmatmul.mubr.msk.f32.gmra.mrb[76].mxu1 %vm1196_vm13, %v3416_v42 }
 0x130   : > { %v1050_v63 = vpop.permute.xlu1 %1049  ;;  %3112 = vmatprep.mubr.msk.f32.mxu1 %vm1199_vm14, %v3416_v42  ;;  %v410_v0 = vpop.permute.xlu0 %409 }
 0x131   : > { %vm560_vm15 = vcmp.eq.s32.totalorder %v3750_v34, %v410_v0  ;;  %vm561_vm0 = vcmp.eq.s32.totalorder %v3755_v37, %v410_v0  ;;  %vm1201_vm2 = vcmp.eq.s32.totalorder %v3755_v37, %v1050_v63  ;;  %vm1200_vm5 = vcmp.eq.s32.totalorder %v3750_v34, %v1050_v63 }
 0x132   : > { %2986 = vmatprep.mubr.msk.f32.mxu0 %vm561_vm0, %v3416_v42 }
 0x133   : > { %2987 = vmatmul.mubr.msk.f32.gmra.mrb[80].mxu0 %vm560_vm15, %v3416_v42  ;;  %3113 = vmatmul.mubr.msk.f32.gmra.mrb[78].mxu1 %vm1198_vm1, %v3416_v42 }
 0x134   : > { %v1053_v1 = vpop.permute.xlu1 %1052  ;;  %3114 = vmatprep.mubr.msk.f32.mxu1 %vm1201_vm2, %v3416_v42  ;;  %v413_v2 = vpop.permute.xlu0 %412 }
 0x135   : > { %vm562_vm3 = vcmp.eq.s32.totalorder %v3750_v34, %v413_v2  ;;  %vm563_vm4 = vcmp.eq.s32.totalorder %v3755_v37, %v413_v2  ;;  %vm1203_vm6 = vcmp.eq.s32.totalorder %v3755_v37, %v1053_v1  ;;  %vm1202_vm9 = vcmp.eq.s32.totalorder %v3750_v34, %v1053_v1 }
 0x136   : > { %2988 = vmatprep.mubr.msk.f32.mxu0 %vm563_vm4, %v3416_v42 }
 0x137   : > { %2989 = vmatmul.mubr.msk.f32.gmra.mrb[82].mxu0 %vm562_vm3, %v3416_v42  ;;  %3115 = vmatmul.mubr.msk.f32.gmra.mrb[80].mxu1 %vm1200_vm5, %v3416_v42 }
 0x138   : > { %v1056_v3 = vpop.permute.xlu1 %1055  ;;  %3116 = vmatprep.mubr.msk.f32.mxu1 %vm1203_vm6, %v3416_v42  ;;  %v416_v4 = vpop.permute.xlu0 %415 }
 0x139   : > { %vm564_vm7 = vcmp.eq.s32.totalorder %v3750_v34, %v416_v4  ;;  %vm565_vm8 = vcmp.eq.s32.totalorder %v3755_v37, %v416_v4  ;;  %vm1205_vm10 = vcmp.eq.s32.totalorder %v3755_v37, %v1056_v3  ;;  %vm1204_vm13 = vcmp.eq.s32.totalorder %v3750_v34, %v1056_v3 }
 0x13a   : > { %2990 = vmatprep.mubr.msk.f32.mxu0 %vm565_vm8, %v3416_v42 }
 0x13b   : > { %2991 = vmatmul.mubr.msk.f32.gmra.mrb[84].mxu0 %vm564_vm7, %v3416_v42  ;;  %3117 = vmatmul.mubr.msk.f32.gmra.mrb[82].mxu1 %vm1202_vm9, %v3416_v42 }
 0x13c   : > { %v1059_v5 = vpop.permute.xlu1 %1058  ;;  %3118 = vmatprep.mubr.msk.f32.mxu1 %vm1205_vm10, %v3416_v42  ;;  %v419_v6 = vpop.permute.xlu0 %418 }
 0x13d   : > { %vm566_vm11 = vcmp.eq.s32.totalorder %v3750_v34, %v419_v6  ;;  %vm567_vm12 = vcmp.eq.s32.totalorder %v3755_v37, %v419_v6  ;;  %vm1207_vm14 = vcmp.eq.s32.totalorder %v3755_v37, %v1059_v5  ;;  %vm1206_vm1 = vcmp.eq.s32.totalorder %v3750_v34, %v1059_v5 }
 0x13e   : > { %2992 = vmatprep.mubr.msk.f32.mxu0 %vm567_vm12, %v3416_v42 }
 0x13f   : > { %2993 = vmatmul.mubr.msk.f32.gmra.mrb[86].mxu0 %vm566_vm11, %v3416_v42  ;;  %3119 = vmatmul.mubr.msk.f32.gmra.mrb[84].mxu1 %vm1204_vm13, %v3416_v42 }
 0x140   : > { %v1062_v7 = vpop.permute.xlu1 %1061  ;;  %3120 = vmatprep.mubr.msk.f32.mxu1 %vm1207_vm14, %v3416_v42  ;;  %v422_v8 = vpop.permute.xlu0 %421 }
 0x141   : > { %vm568_vm15 = vcmp.eq.s32.totalorder %v3750_v34, %v422_v8  ;;  %vm569_vm0 = vcmp.eq.s32.totalorder %v3755_v37, %v422_v8  ;;  %vm1209_vm2 = vcmp.eq.s32.totalorder %v3755_v37, %v1062_v7  ;;  %vm1208_vm5 = vcmp.eq.s32.totalorder %v3750_v34, %v1062_v7 }
 0x142   : > { %2994 = vmatprep.mubr.msk.f32.mxu0 %vm569_vm0, %v3416_v42 }
 0x143   : > { %2995 = vmatmul.mubr.msk.f32.gmra.mrb[88].mxu0 %vm568_vm15, %v3416_v42  ;;  %3121 = vmatmul.mubr.msk.f32.gmra.mrb[86].mxu1 %vm1206_vm1, %v3416_v42 }
 0x144   : > { %v1065_v9 = vpop.permute.xlu1 %1064  ;;  %3122 = vmatprep.mubr.msk.f32.mxu1 %vm1209_vm2, %v3416_v42  ;;  %v425_v10 = vpop.permute.xlu0 %424 }
 0x145   : > { %vm570_vm3 = vcmp.eq.s32.totalorder %v3750_v34, %v425_v10  ;;  %vm571_vm4 = vcmp.eq.s32.totalorder %v3755_v37, %v425_v10  ;;  %vm1211_vm6 = vcmp.eq.s32.totalorder %v3755_v37, %v1065_v9  ;;  %vm1210_vm9 = vcmp.eq.s32.totalorder %v3750_v34, %v1065_v9 }
 0x146   : > { %2996 = vmatprep.mubr.msk.f32.mxu0 %vm571_vm4, %v3416_v42 }
 0x147   : > { %2997 = vmatmul.mubr.msk.f32.gmra.mrb[90].mxu0 %vm570_vm3, %v3416_v42  ;;  %3123 = vmatmul.mubr.msk.f32.gmra.mrb[88].mxu1 %vm1208_vm5, %v3416_v42 }
 0x148   : > { %v1068_v11 = vpop.permute.xlu1 %1067  ;;  %3124 = vmatprep.mubr.msk.f32.mxu1 %vm1211_vm6, %v3416_v42  ;;  %v428_v12 = vpop.permute.xlu0 %427 }
 0x149   : > { %vm572_vm7 = vcmp.eq.s32.totalorder %v3750_v34, %v428_v12  ;;  %vm573_vm8 = vcmp.eq.s32.totalorder %v3755_v37, %v428_v12  ;;  %vm1213_vm10 = vcmp.eq.s32.totalorder %v3755_v37, %v1068_v11  ;;  %vm1212_vm11 = vcmp.eq.s32.totalorder %v3750_v34, %v1068_v11 }
 0x14a   : > { %2998 = vmatprep.mubr.msk.f32.mxu0 %vm573_vm8, %v3416_v42 }
 0x14b   : > { %2999 = vmatmul.mubr.msk.f32.gmra.mrb[92].mxu0 %vm572_vm7, %v3416_v42  ;;  %3125 = vmatmul.mubr.msk.f32.gmra.mrb[90].mxu1 %vm1210_vm9, %v3416_v42 }
 0x14c   : > { %v1071_v13 = vpop.permute.xlu1 %1070  ;;  %3126 = vmatprep.mubr.msk.f32.mxu1 %vm1213_vm10, %v3416_v42  ;;  %v431_v14 = vpop.permute.xlu0 %430 }
 0x14d   : > { %vm574_vm12 = vcmp.eq.s32.totalorder %v3750_v34, %v431_v14  ;;  %vm575_vm13 = vcmp.eq.s32.totalorder %v3755_v37, %v431_v14  ;;  %vm1215_vm14 = vcmp.eq.s32.totalorder %v3755_v37, %v1071_v13  ;;  %vm1214_vm15 = vcmp.eq.s32.totalorder %v3750_v34, %v1071_v13 }
 0x14e   : > { %3000 = vmatprep.mubr.msk.f32.mxu0 %vm575_vm13, %v3416_v42 }
 0x14f   : > { %3127 = vmatmul.mubr.msk.f32.gmra.mrb[92].mxu1 %vm1212_vm11, %v3416_v42  ;;  %3001 = vmatmul.mubr.msk.f32.gmra.mrb[94].mxu0 %vm574_vm12, %v3416_v42 }
 0x150   : > { %v1074_v15 = vpop.permute.xlu1 %1073  ;;  %3128 = vmatprep.mubr.msk.f32.mxu1 %vm1215_vm14, %v3416_v42  ;;  %v434_v16 = vpop.permute.xlu0 %433 }
 0x151   : > { %vm576_vm0 = vcmp.eq.s32.totalorder %v3750_v34, %v434_v16  ;;  %vm577_vm1 = vcmp.eq.s32.totalorder %v3755_v37, %v434_v16  ;;  %vm1217_vm2 = vcmp.eq.s32.totalorder %v3755_v37, %v1074_v15  ;;  %vm1216_vm3 = vcmp.eq.s32.totalorder %v3750_v34, %v1074_v15 }
 0x152   : > { %3002 = vmatprep.mubr.msk.f32.mxu0 %vm577_vm1, %v3416_v42 }
 0x153   : > { %3129 = vmatmul.mubr.msk.f32.gmra.mrb[94].mxu1 %vm1214_vm15, %v3416_v42  ;;  %3003 = vmatmul.mubr.msk.f32.gmra.mrb[96].mxu0 %vm576_vm0, %v3416_v42 }
 0x154   : > { %v1077_v17 = vpop.permute.xlu1 %1076  ;;  %3130 = vmatprep.mubr.msk.f32.mxu1 %vm1217_vm2, %v3416_v42  ;;  %v437_v18 = vpop.permute.xlu0 %436 }
 0x155   : > { %vm578_vm4 = vcmp.eq.s32.totalorder %v3750_v34, %v437_v18  ;;  %vm579_vm5 = vcmp.eq.s32.totalorder %v3755_v37, %v437_v18  ;;  %vm1219_vm6 = vcmp.eq.s32.totalorder %v3755_v37, %v1077_v17  ;;  %vm1218_vm7 = vcmp.eq.s32.totalorder %v3750_v34, %v1077_v17 }
 0x156   : > { %3004 = vmatprep.mubr.msk.f32.mxu0 %vm579_vm5, %v3416_v42 }
 0x157   : > { %3131 = vmatmul.mubr.msk.f32.gmra.mrb[96].mxu1 %vm1216_vm3, %v3416_v42  ;;  %3005 = vmatmul.mubr.msk.f32.gmra.mrb[98].mxu0 %vm578_vm4, %v3416_v42 }
 0x158   : > { %v1080_v19 = vpop.permute.xlu1 %1079  ;;  %3132 = vmatprep.mubr.msk.f32.mxu1 %vm1219_vm6, %v3416_v42  ;;  %v440_v20 = vpop.permute.xlu0 %439 }
 0x159   : > { %vm580_vm8 = vcmp.eq.s32.totalorder %v3750_v34, %v440_v20  ;;  %vm581_vm9 = vcmp.eq.s32.totalorder %v3755_v37, %v440_v20  ;;  %vm1221_vm10 = vcmp.eq.s32.totalorder %v3755_v37, %v1080_v19  ;;  %vm1220_vm11 = vcmp.eq.s32.totalorder %v3750_v34, %v1080_v19 }
 0x15a   : > { %3006 = vmatprep.mubr.msk.f32.mxu0 %vm581_vm9, %v3416_v42 }
 0x15b   : > { %3133 = vmatmul.mubr.msk.f32.gmra.mrb[98].mxu1 %vm1218_vm7, %v3416_v42  ;;  %3007 = vmatmul.mubr.msk.f32.gmra.mrb[100].mxu0 %vm580_vm8, %v3416_v42 }
 0x15c   : > { %v1083_v21 = vpop.permute.xlu1 %1082  ;;  %3134 = vmatprep.mubr.msk.f32.mxu1 %vm1221_vm10, %v3416_v42  ;;  %v443_v22 = vpop.permute.xlu0 %442 }
 0x15d   : > { %vm582_vm12 = vcmp.eq.s32.totalorder %v3750_v34, %v443_v22  ;;  %vm583_vm13 = vcmp.eq.s32.totalorder %v3755_v37, %v443_v22  ;;  %vm1223_vm14 = vcmp.eq.s32.totalorder %v3755_v37, %v1083_v21  ;;  %vm1222_vm15 = vcmp.eq.s32.totalorder %v3750_v34, %v1083_v21 }
 0x15e   : > { %3008 = vmatprep.mubr.msk.f32.mxu0 %vm583_vm13, %v3416_v42 }
 0x15f   : > { %3135 = vmatmul.mubr.msk.f32.gmra.mrb[100].mxu1 %vm1220_vm11, %v3416_v42  ;;  %3009 = vmatmul.mubr.msk.f32.gmra.mrb[102].mxu0 %vm582_vm12, %v3416_v42 }
 0x160   : > { %v1086_v23 = vpop.permute.xlu1 %1085  ;;  %3136 = vmatprep.mubr.msk.f32.mxu1 %vm1223_vm14, %v3416_v42  ;;  %v446_v24 = vpop.permute.xlu0 %445 }
 0x161   : > { %vm584_vm0 = vcmp.eq.s32.totalorder %v3750_v34, %v446_v24  ;;  %vm585_vm1 = vcmp.eq.s32.totalorder %v3755_v37, %v446_v24  ;;  %vm1225_vm2 = vcmp.eq.s32.totalorder %v3755_v37, %v1086_v23  ;;  %vm1224_vm3 = vcmp.eq.s32.totalorder %v3750_v34, %v1086_v23 }
 0x162   : > { %3010 = vmatprep.mubr.msk.f32.mxu0 %vm585_vm1, %v3416_v42 }
 0x163   : > { %3137 = vmatmul.mubr.msk.f32.gmra.mrb[102].mxu1 %vm1222_vm15, %v3416_v42  ;;  %3011 = vmatmul.mubr.msk.f32.gmra.mrb[104].mxu0 %vm584_vm0, %v3416_v42 }
 0x164   : > { %v1089_v25 = vpop.permute.xlu1 %1088  ;;  %3138 = vmatprep.mubr.msk.f32.mxu1 %vm1225_vm2, %v3416_v42  ;;  %v449_v26 = vpop.permute.xlu0 %448 }
 0x165   : > { %vm586_vm4 = vcmp.eq.s32.totalorder %v3750_v34, %v449_v26  ;;  %vm587_vm5 = vcmp.eq.s32.totalorder %v3755_v37, %v449_v26  ;;  %vm1227_vm6 = vcmp.eq.s32.totalorder %v3755_v37, %v1089_v25  ;;  %vm1226_vm7 = vcmp.eq.s32.totalorder %v3750_v34, %v1089_v25 }
 0x166   : > { %v1602_v27 = vpop.f32.mrb[0].mxu0  ;;  %3012 = vmatprep.mubr.msk.f32.mxu0 %vm587_vm5, %v3416_v42 }
 0x167   : > { %v1604_v28 = vpop.f32.mrb[1].mxu0  ;;  %3139 = vmatmul.mubr.msk.f32.gmra.mrb[104].mxu1 %vm1224_vm3, %v3416_v42  ;;  %3013 = vmatmul.mubr.msk.f32.gmra.mrb[106].mxu0 %vm586_vm4, %v3416_v42 }
 0x168   : > { %v1092_v29 = vpop.permute.xlu1 %1091  ;;  %3140 = vmatprep.mubr.msk.f32.mxu1 %vm1227_vm6, %v3416_v42  ;;  %v452_v30 = vpop.permute.xlu0 %451 }
 0x169   : > { %vm588_vm8 = vcmp.eq.s32.totalorder %v3750_v34, %v452_v30  ;;  %vm589_vm9 = vcmp.eq.s32.totalorder %v3755_v37, %v452_v30  ;;  %vm1229_vm10 = vcmp.eq.s32.totalorder %v3755_v37, %v1092_v29  ;;  %vm1228_vm11 = vcmp.eq.s32.totalorder %v3750_v34, %v1092_v29 }
 0x16a   : > { %v1607_v32 = vpop.f32.mrb[2].mxu0  ;;  %v2019_v33 = vpop.f32.mrb[0].mxu1  ;;  %3014 = vmatprep.mubr.msk.f32.mxu0 %vm589_vm9, %v3416_v42 }
 0x16b   : > { %v4256_v35 = vmul.f32 %v2019_v33, %v1602_v27  ;;  %v1609_v36 = vpop.f32.mrb[3].mxu0  ;;  %v2021_v38 = vpop.f32.mrb[1].mxu1  ;;  %3141 = vmatmul.mubr.msk.f32.gmra.mrb[106].mxu1 %vm1226_vm7, %v3416_v42  ;;  %3015 = vmatmul.mubr.msk.f32.gmra.mrb[108].mxu0 %vm588_vm8, %v3416_v42 }
 0x16c   : > { %v1095_v39 = vpop.permute.xlu1 %1094  ;;  %3142 = vmatprep.mubr.msk.f32.mxu1 %vm1229_vm10, %v3416_v42  ;;  %v455_v40 = vpop.permute.xlu0 %454 }
 0x16d   : > { %vm590_vm12 = vcmp.eq.s32.totalorder %v3750_v34, %v455_v40  ;;  %vm591_vm13 = vcmp.eq.s32.totalorder %v3755_v37, %v455_v40  ;;  %vm1231_vm14 = vcmp.eq.s32.totalorder %v3755_v37, %v1095_v39  ;;  %vm1230_vm15 = vcmp.eq.s32.totalorder %v3750_v34, %v1095_v39 }
 0x16e   : > { %v1612_v41 = vpop.f32.mrb[4].mxu0  ;;  %v2024_v43 = vpop.f32.mrb[2].mxu1  ;;  %3016 = vmatprep.mubr.msk.f32.mxu0 %vm591_vm13, %v3416_v42 }
 0x16f   : > { %v4266_v44 = vmul.f32 %v2024_v43, %v1607_v32  ;;  %v1614_v45 = vpop.f32.mrb[5].mxu0  ;;  %v2026_v46 = vpop.f32.mrb[3].mxu1  ;;  %3143 = vmatmul.mubr.msk.f32.gmra.mrb[108].mxu1 %vm1228_vm11, %v3416_v42  ;;  %3017 = vmatmul.mubr.msk.f32.gmra.mrb[110].mxu0 %vm590_vm12, %v3416_v42 }
 0x170   : > { %v1098_v47 = vpop.permute.xlu1 %1097  ;;  %3144 = vmatprep.mubr.msk.f32.mxu1 %vm1231_vm14, %v3416_v42  ;;  %v458_v49 = vpop.permute.xlu0 %457 }
 0x171   : > { %v3330_v48 = vpack.c.bf16 %v4266_v44, %v4256_v35  ;;  %vm592_vm0 = vcmp.eq.s32.totalorder %v3750_v34, %v458_v49  ;;  %vm593_vm1 = vcmp.eq.s32.totalorder %v3755_v37, %v458_v49  ;;  %vm1233_vm2 = vcmp.eq.s32.totalorder %v3755_v37, %v1098_v47 }
 0x172   : > { %v1617_v50 = vpop.f32.mrb[6].mxu0  ;;  %v2029_v51 = vpop.f32.mrb[4].mxu1  ;;  %3018 = vmatprep.mubr.msk.f32.mxu0 %vm593_vm1, %v3416_v42  ;;  %vm1232_vm3 = vcmp.eq.s32.totalorder %v3750_v34, %v1098_v47 }
 0x173   : > { %v4278_v52 = vmul.f32 %v2029_v51, %v1612_v41  ;;  %v1619_v53 = vpop.f32.mrb[7].mxu0  ;;  %v2031_v54 = vpop.f32.mrb[5].mxu1  ;;  %3145 = vmatmul.mubr.msk.f32.gmra.mrb[110].mxu1 %vm1230_vm15, %v3416_v42  ;;  %3019 = vmatmul.mubr.msk.f32.gmra.mrb[112].mxu0 %vm592_vm0, %v3416_v42 }
 0x174   : > { %v1101_v55 = vpop.permute.xlu1 %1100  ;;  %3146 = vmatprep.mubr.msk.f32.mxu1 %vm1233_vm2, %v3416_v42  ;;  %v461_v56 = vpop.permute.xlu0 %460 }
 0x175   : > { %vm594_vm4 = vcmp.eq.s32.totalorder %v3750_v34, %v461_v56  ;;  %vm595_vm5 = vcmp.eq.s32.totalorder %v3755_v37, %v461_v56  ;;  %vm1235_vm6 = vcmp.eq.s32.totalorder %v3755_v37, %v1101_v55  ;;  %vm1234_vm7 = vcmp.eq.s32.totalorder %v3750_v34, %v1101_v55 }
 0x176   : > { %v1622_v57 = vpop.f32.mrb[8].mxu0  ;;  %v2034_v58 = vpop.f32.mrb[6].mxu1  ;;  %3020 = vmatprep.mubr.msk.f32.mxu0 %vm595_vm5, %v3416_v42 }
 0x177   : > { %v4288_v59 = vmul.f32 %v2034_v58, %v1617_v50  ;;  %v1624_v60 = vpop.f32.mrb[9].mxu0  ;;  %v2036_v61 = vpop.f32.mrb[7].mxu1  ;;  %3147 = vmatmul.mubr.msk.f32.gmra.mrb[112].mxu1 %vm1232_vm3, %v3416_v42  ;;  %3021 = vmatmul.mubr.msk.f32.gmra.mrb[114].mxu0 %vm594_vm4, %v3416_v42 }
 0x178   : > { %v1104_v62 = vpop.permute.xlu1 %1103  ;;  %3148 = vmatprep.mubr.msk.f32.mxu1 %vm1235_vm6, %v3416_v42  ;;  %v464_v0 = vpop.permute.xlu0 %463 }
 0x179   : > { %v3334_v63 = vpack.c.bf16 %v4288_v59, %v4278_v52  ;;  %vm596_vm8 = vcmp.eq.s32.totalorder %v3750_v34, %v464_v0  ;;  %vm597_vm9 = vcmp.eq.s32.totalorder %v3755_v37, %v464_v0  ;;  %vm1237_vm10 = vcmp.eq.s32.totalorder %v3755_v37, %v1104_v62 }
 0x17a   : > { %v1627_v1 = vpop.f32.mrb[10].mxu0  ;;  %v2039_v2 = vpop.f32.mrb[8].mxu1  ;;  %3022 = vmatprep.mubr.msk.f32.mxu0 %vm597_vm9, %v3416_v42  ;;  %vm1236_vm11 = vcmp.eq.s32.totalorder %v3750_v34, %v1104_v62 }
 0x17b   : > { %v4300_v3 = vmul.f32 %v2039_v2, %v1622_v57  ;;  %v1629_v4 = vpop.f32.mrb[11].mxu0  ;;  %v2041_v5 = vpop.f32.mrb[9].mxu1  ;;  %3149 = vmatmul.mubr.msk.f32.gmra.mrb[114].mxu1 %vm1234_vm7, %v3416_v42  ;;  %3023 = vmatmul.mubr.msk.f32.gmra.mrb[116].mxu0 %vm596_vm8, %v3416_v42 }
 0x17c   : > { %v1107_v6 = vpop.permute.xlu1 %1106  ;;  %3150 = vmatprep.mubr.msk.f32.mxu1 %vm1237_vm10, %v3416_v42  ;;  %v467_v7 = vpop.permute.xlu0 %466 }
 0x17d   : > { %vm598_vm12 = vcmp.eq.s32.totalorder %v3750_v34, %v467_v7  ;;  %vm599_vm13 = vcmp.eq.s32.totalorder %v3755_v37, %v467_v7  ;;  %vm1239_vm14 = vcmp.eq.s32.totalorder %v3755_v37, %v1107_v6  ;;  %vm1238_vm15 = vcmp.eq.s32.totalorder %v3750_v34, %v1107_v6 }
 0x17e   : > { %v1632_v8 = vpop.f32.mrb[12].mxu0  ;;  %v2044_v9 = vpop.f32.mrb[10].mxu1  ;;  %3024 = vmatprep.mubr.msk.f32.mxu0 %vm599_vm13, %v3416_v42 }
 0x17f   : > { %v4310_v10 = vmul.f32 %v2044_v9, %v1627_v1  ;;  %v1634_v11 = vpop.f32.mrb[13].mxu0  ;;  %v2046_v12 = vpop.f32.mrb[11].mxu1  ;;  %3151 = vmatmul.mubr.msk.f32.gmra.mrb[116].mxu1 %vm1236_vm11, %v3416_v42  ;;  %3025 = vmatmul.mubr.msk.f32.gmra.mrb[118].mxu0 %vm598_vm12, %v3416_v42 }
 0x180   : > { %v1110_v13 = vpop.permute.xlu1 %1109  ;;  %3152 = vmatprep.mubr.msk.f32.mxu1 %vm1239_vm14, %v3416_v42  ;;  %v470_v15 = vpop.permute.xlu0 %469 }
 0x181   : > { %v3338_v14 = vpack.c.bf16 %v4310_v10, %v4300_v3  ;;  %vm600_vm0 = vcmp.eq.s32.totalorder %v3750_v34, %v470_v15  ;;  %vm601_vm1 = vcmp.eq.s32.totalorder %v3755_v37, %v470_v15  ;;  %vm1241_vm2 = vcmp.eq.s32.totalorder %v3755_v37, %v1110_v13 }
 0x182   : > { %v1637_v16 = vpop.f32.mrb[14].mxu0  ;;  %v2049_v17 = vpop.f32.mrb[12].mxu1  ;;  %3026 = vmatprep.mubr.msk.f32.mxu0 %vm601_vm1, %v3416_v42  ;;  %vm1240_vm3 = vcmp.eq.s32.totalorder %v3750_v34, %v1110_v13 }
 0x183   : > { %v4322_v18 = vmul.f32 %v2049_v17, %v1632_v8  ;;  %v1639_v19 = vpop.f32.mrb[15].mxu0  ;;  %v2051_v20 = vpop.f32.mrb[13].mxu1  ;;  %3153 = vmatmul.mubr.msk.f32.gmra.mrb[118].mxu1 %vm1238_vm15, %v3416_v42  ;;  %3027 = vmatmul.mubr.msk.f32.gmra.mrb[120].mxu0 %vm600_vm0, %v3416_v42  ;;  %vm2575_vm0 = vcmp.lt.s32.totalorder %v221_v31, 512 }
 0x184   : > { %v1113_v21 = vpop.permute.xlu1 %1112  ;;  %3154 = vmatprep.mubr.msk.f32.mxu1 %vm1241_vm2, %v3416_v42  ;;  %v473_v22 = vpop.permute.xlu0 %472 }
 0x185   : > { %vm602_vm4 = vcmp.eq.s32.totalorder %v3750_v34, %v473_v22  ;;  %vm603_vm5 = vcmp.eq.s32.totalorder %v3755_v37, %v473_v22  ;;  %vm1243_vm6 = vcmp.eq.s32.totalorder %v3755_v37, %v1113_v21  ;;  %vm1242_vm7 = vcmp.eq.s32.totalorder %v3750_v34, %v1113_v21 }
 0x186   : > { %v1642_v23 = vpop.f32.mrb[16].mxu0  ;;  %v2054_v24 = vpop.f32.mrb[14].mxu1  ;;  %3028 = vmatprep.mubr.msk.f32.mxu0 %vm603_vm5, %v3416_v42 }
 0x187   : > { %v4332_v25 = vmul.f32 %v2054_v24, %v1637_v16  ;;  %v1644_v26 = vpop.f32.mrb[17].mxu0  ;;  %v2056_v27 = vpop.f32.mrb[15].mxu1  ;;  %3155 = vmatmul.mubr.msk.f32.gmra.mrb[120].mxu1 %vm1240_vm3, %v3416_v42  ;;  %3029 = vmatmul.mubr.msk.f32.gmra.mrb[122].mxu0 %vm602_vm4, %v3416_v42 }
 0x188   : > { %v1116_v28 = vpop.permute.xlu1 %1115  ;;  %3156 = vmatprep.mubr.msk.f32.mxu1 %vm1243_vm6, %v3416_v42  ;;  %v476_v30 = vpop.permute.xlu0 %475 }
 0x189   : > { %v3342_v29 = vpack.c.bf16 %v4332_v25, %v4322_v18  ;;  %vm604_vm8 = vcmp.eq.s32.totalorder %v3750_v34, %v476_v30  ;;  %vm605_vm9 = vcmp.eq.s32.totalorder %v3755_v37, %v476_v30  ;;  %vm1245_vm10 = vcmp.eq.s32.totalorder %v3755_v37, %v1116_v28 }
 0x18a   : > { %v1647_v32 = vpop.f32.mrb[18].mxu0  ;;  %v2059_v33 = vpop.f32.mrb[16].mxu1  ;;  %3030 = vmatprep.mubr.msk.f32.mxu0 %vm605_vm9, %v3416_v42  ;;  %vm1244_vm11 = vcmp.eq.s32.totalorder %v3750_v34, %v1116_v28 }
 0x18b   : > { %v4344_v36 = vmul.f32 %v2059_v33, %v1642_v23  ;;  %v1649_v38 = vpop.f32.mrb[19].mxu0  ;;  %v2061_v39 = vpop.f32.mrb[17].mxu1  ;;  %3157 = vmatmul.mubr.msk.f32.gmra.mrb[122].mxu1 %vm1242_vm7, %v3416_v42  ;;  %3031 = vmatmul.mubr.msk.f32.gmra.mrb[124].mxu0 %vm604_vm8, %v3416_v42 }
 0x18c   : > { %v1119_v40 = vpop.permute.xlu1 %1118  ;;  %3158 = vmatprep.mubr.msk.f32.mxu1 %vm1245_vm10, %v3416_v42  ;;  %v479_v41 = vpop.permute.xlu0 %478 }
 0x18d   : > { %vm606_vm12 = vcmp.eq.s32.totalorder %v3750_v34, %v479_v41  ;;  %vm607_vm13 = vcmp.eq.s32.totalorder %v3755_v37, %v479_v41  ;;  %vm1247_vm14 = vcmp.eq.s32.totalorder %v3755_v37, %v1119_v40  ;;  %vm1246_vm15 = vcmp.eq.s32.totalorder %v3750_v34, %v1119_v40 }
 0x18e   : > { %v1652_v43 = vpop.f32.mrb[20].mxu0  ;;  %v2064_v45 = vpop.f32.mrb[18].mxu1  ;;  %3032 = vmatprep.mubr.msk.f32.mxu0 %vm607_vm13, %v3416_v42 }
 0x18f   : > { %v4354_v46 = vmul.f32 %v2064_v45, %v1647_v32  ;;  %v1654_v47 = vpop.f32.mrb[21].mxu0  ;;  %v2066_v49 = vpop.f32.mrb[19].mxu1  ;;  %3159 = vmatmul.mubr.msk.f32.gmra.mrb[124].mxu1 %vm1244_vm11, %v3416_v42  ;;  %3033 = vmatmul.mubr.msk.f32.gmra.mrb[126].mxu0 %vm606_vm12, %v3416_v42 }
 0x190   : > { %3160 = vmatprep.mubr.msk.f32.mxu1 %vm1247_vm14, %v3416_v42  ;;  %3196 = vmatprep.mubr.f32.mxu0 %v3416_v42 }
 0x191   : > { %v3346_v50 = vpack.c.bf16 %v4354_v46, %v4344_v36 }
 0x192   : > { %v1657_v37 = vpop.f32.mrb[22].mxu0  ;;  %v2069_v51 = vpop.f32.mrb[20].mxu1 }
 0x193   : > { %v4363_v53 = vmul.f32 %v2069_v51, %v1652_v43  ;;  %v1659_v54 = vpop.f32.mrb[23].mxu0  ;;  %v2071_v55 = vpop.f32.mrb[21].mxu1  ;;  %3161 = vmatmul.mubr.msk.f32.gmra.mrb[126].mxu1 %vm1246_vm15, %v3416_v42 }
 0x194   : > { %3230 = vmatprep.mubr.f32.mxu1 %v3416_v42 }
 0x196   : > { %v1662_v56 = vpop.f32.mrb[24].mxu0  ;;  %v2074_v57 = vpop.f32.mrb[22].mxu1 }
 0x197   : > { %v4367_v58 = vmul.f32 %v2074_v57, %v1657_v37  ;;  %v1664_v60 = vpop.f32.mrb[25].mxu0  ;;  %v2076_v61 = vpop.f32.mrb[23].mxu1 }
 0x199   : > { %v3350_v62 = vpack.c.bf16 %v4367_v58, %v4363_v53 }
 0x19a   : > { %v1667_v34 = vpop.f32.mrb[26].mxu0  ;;  %v2079_v0 = vpop.f32.mrb[24].mxu1 }
 0x19b   : > { %v4371_v1 = vmul.f32 %v2079_v0, %v1662_v56  ;;  %v1669_v2 = vpop.f32.mrb[27].mxu0  ;;  %v2081_v4 = vpop.f32.mrb[25].mxu1 }
 0x19e   : > { %v1672_v5 = vpop.f32.mrb[28].mxu0  ;;  %v2084_v6 = vpop.f32.mrb[26].mxu1 }
 0x19f   : > { %v4373_v7 = vmul.f32 %v2084_v6, %v1667_v34  ;;  %v1674_v8 = vpop.f32.mrb[29].mxu0  ;;  %v2086_v9 = vpop.f32.mrb[27].mxu1 }
 0x1a1   : > { %v3354_v11 = vpack.c.bf16 %v4373_v7, %v4371_v1 }
 0x1a2   : > { %v1677_v12 = vpop.f32.mrb[30].mxu0  ;;  %v2089_v13 = vpop.f32.mrb[28].mxu1 }
 0x1a3   : > { %v4377_v15 = vmul.f32 %v2089_v13, %v1672_v5  ;;  %v1679_v16 = vpop.f32.mrb[31].mxu0  ;;  %v2091_v17 = vpop.f32.mrb[29].mxu1 }
 0x1a6   : > { %v1682_v19 = vpop.f32.mrb[32].mxu0  ;;  %v2094_v20 = vpop.f32.mrb[30].mxu1 }
 0x1a7   : > { %v4379_v21 = vmul.f32 %v2094_v20, %v1677_v12  ;;  %v1684_v22 = vpop.f32.mrb[33].mxu0  ;;  %v2096_v23 = vpop.f32.mrb[31].mxu1 }
 0x1a9   : > { %v3358_v24 = vpack.c.bf16 %v4379_v21, %v4377_v15 }
 0x1aa   : > { %v1687_v26 = vpop.f32.mrb[34].mxu0  ;;  %v2099_v27 = vpop.f32.mrb[32].mxu1 }
 0x1ab   : > { %v2354_v28 = vmul.f32 %v2099_v27, %v1682_v19  ;;  %v1689_v30 = vpop.f32.mrb[35].mxu0  ;;  %v2101_v32 = vpop.f32.mrb[33].mxu1 }
 0x1ae   : > { %v1692_v33 = vpop.f32.mrb[36].mxu0  ;;  %v2104_v38 = vpop.f32.mrb[34].mxu1 }
 0x1af   : > { %v2355_v39 = vmul.f32 %v2104_v38, %v1687_v26  ;;  %v1694_v40 = vpop.f32.mrb[37].mxu0  ;;  %v2106_v41 = vpop.f32.mrb[35].mxu1 }
 0x1b1   : > { %v3328_v43 = vpack.c.bf16 %v2355_v39, %v2354_v28 }
 0x1b2   : > { %v1697_v45 = vpop.f32.mrb[38].mxu0  ;;  %v2109_v47 = vpop.f32.mrb[36].mxu1 }
 0x1b3   : > { %v2356_v49 = vmul.f32 %v2109_v47, %v1692_v33  ;;  %v1699_v37 = vpop.f32.mrb[39].mxu0  ;;  %v2111_v51 = vpop.f32.mrb[37].mxu1  ;;  %3329 = vmatprep.subr.bf16.mxu0 %v3328_v43 }
 0x1b4   : > { %3331 = vmatpush3.bf16.xpose.msra.mxu0 %v3330_v48 }
 0x1b6   : > { %v1702_v54 = vpop.f32.mrb[40].mxu0  ;;  %v2114_v55 = vpop.f32.mrb[38].mxu1 }
 0x1b7   : > { %v2357_v56 = vmul.f32 %v2114_v55, %v1697_v45  ;;  %v1704_v57 = vpop.f32.mrb[41].mxu0  ;;  %v2116_v60 = vpop.f32.mrb[39].mxu1 }
 0x1b9   : > { %v3332_v61 = vpack.c.bf16 %v2357_v56, %v2356_v49 }
 0x1ba   : > { %v1707_v34 = vpop.f32.mrb[42].mxu0  ;;  %v2119_v0 = vpop.f32.mrb[40].mxu1 }
 0x1bb   : > { %v2358_v2 = vmul.f32 %v2119_v0, %v1702_v54  ;;  %v1709_v4 = vpop.f32.mrb[43].mxu0  ;;  %v2121_v5 = vpop.f32.mrb[41].mxu1  ;;  %3333 = vmatprep.subr.bf16.mxu0 %v3332_v61 }
 0x1bc   : > { %3335 = vmatpush3.bf16.xpose.msra.mxu0 %v3334_v63 }
 0x1be   : > { %v1712_v6 = vpop.f32.mrb[44].mxu0  ;;  %v2124_v8 = vpop.f32.mrb[42].mxu1 }
 0x1bf   : > { %v2359_v35 = vmul.f32 %v2124_v8, %v1707_v34  ;;  %v1714_v44 = vpop.f32.mrb[45].mxu0  ;;  %v2126_v48 = vpop.f32.mrb[43].mxu1 }
 0x1c1   : > { %v3336_v9 = vpack.c.bf16 %v2359_v35, %v2358_v2 }
 0x1c2   : > { %v1717_v12 = vpop.f32.mrb[46].mxu0  ;;  %v2129_v13 = vpop.f32.mrb[44].mxu1 }
 0x1c3   : > { %v2360_v16 = vmul.f32 %v2129_v13, %v1712_v6  ;;  %v1719_v17 = vpop.f32.mrb[47].mxu0  ;;  %v2131_v19 = vpop.f32.mrb[45].mxu1  ;;  %3337 = vmatprep.subr.bf16.mxu0 %v3336_v9 }
 0x1c4   : > { %3339 = vmatpush3.bf16.xpose.msra.mxu0 %v3338_v14 }
 0x1c6   : > { %v1722_v20 = vpop.f32.mrb[48].mxu0  ;;  %v2134_v22 = vpop.f32.mrb[46].mxu1 }
 0x1c7   : > { %v2361_v52 = vmul.f32 %v2134_v22, %v1717_v12  ;;  %v1724_v59 = vpop.f32.mrb[49].mxu0  ;;  %v2136_v63 = vpop.f32.mrb[47].mxu1 }
 0x1c9   : > { %v3340_v23 = vpack.c.bf16 %v2361_v52, %v2360_v16 }
 0x1ca   : > { %v1727_v26 = vpop.f32.mrb[50].mxu0  ;;  %v2139_v27 = vpop.f32.mrb[48].mxu1 }
 0x1cb   : > { %v2362_v28 = vmul.f32 %v2139_v27, %v1722_v20  ;;  %v1729_v30 = vpop.f32.mrb[51].mxu0  ;;  %v2141_v32 = vpop.f32.mrb[49].mxu1  ;;  %3341 = vmatprep.subr.bf16.mxu0 %v3340_v23 }
 0x1cc   : > { %3343 = vmatpush3.bf16.xpose.msra.mxu0 %v3342_v29 }
 0x1ce   : > { %v1732_v33 = vpop.f32.mrb[52].mxu0  ;;  %v2144_v38 = vpop.f32.mrb[50].mxu1 }
 0x1cf   : > { %v2363_v3 = vmul.f32 %v2144_v38, %v1727_v26  ;;  %v1734_v10 = vpop.f32.mrb[53].mxu0  ;;  %v2146_v14 = vpop.f32.mrb[51].mxu1 }
 0x1d1   : > { %v3344_v39 = vpack.c.bf16 %v2363_v3, %v2362_v28 }
 0x1d2   : > { %v1737_v40 = vpop.f32.mrb[54].mxu0  ;;  %v2149_v41 = vpop.f32.mrb[52].mxu1 }
 0x1d3   : > { %v2364_v43 = vmul.f32 %v2149_v41, %v1732_v33  ;;  %v1739_v45 = vpop.f32.mrb[55].mxu0  ;;  %v2151_v47 = vpop.f32.mrb[53].mxu1  ;;  %3345 = vmatprep.subr.bf16.mxu0 %v3344_v39 }
 0x1d4   : > { %3347 = vmatpush3.bf16.xpose.msra.mxu0 %v3346_v50 }
 0x1d6   : > { %v1742_v49 = vpop.f32.mrb[56].mxu0  ;;  %v2154_v37 = vpop.f32.mrb[54].mxu1 }
 0x1d7   : > { %v2365_v18 = vmul.f32 %v2154_v37, %v1737_v40  ;;  %v1744_v25 = vpop.f32.mrb[57].mxu0  ;;  %v2156_v29 = vpop.f32.mrb[55].mxu1 }
 0x1d9   : > { %v3348_v51 = vpack.c.bf16 %v2365_v18, %v2364_v43 }
 0x1da   : > { %v1747_v54 = vpop.f32.mrb[58].mxu0  ;;  %v2159_v55 = vpop.f32.mrb[56].mxu1 }
 0x1db   : > { %v2366_v56 = vmul.f32 %v2159_v55, %v1742_v49  ;;  %v1749_v57 = vpop.f32.mrb[59].mxu0  ;;  %v2161_v60 = vpop.f32.mrb[57].mxu1  ;;  %3349 = vmatprep.subr.bf16.mxu0 %v3348_v51 }
 0x1dc   : > { %3351 = vmatpush3.bf16.xpose.msra.mxu0 %v3350_v62 }
 0x1de   : > { %v1752_v61 = vpop.f32.mrb[60].mxu0  ;;  %v2164_v34 = vpop.f32.mrb[58].mxu1 }
 0x1df   : > { %v2367_v36 = vmul.f32 %v2164_v34, %v1747_v54  ;;  %v1754_v46 = vpop.f32.mrb[61].mxu0  ;;  %v2166_v50 = vpop.f32.mrb[59].mxu1 }
 0x1e1   : > { %v3352_v0 = vpack.c.bf16 %v2367_v36, %v2366_v56 }
 0x1e2   : > { %v1757_v2 = vpop.f32.mrb[62].mxu0  ;;  %v2169_v4 = vpop.f32.mrb[60].mxu1 }
 0x1e3   : > { %v2368_v5 = vmul.f32 %v2169_v4, %v1752_v61  ;;  %v1759_v6 = vpop.f32.mrb[63].mxu0  ;;  %v2171_v8 = vpop.f32.mrb[61].mxu1  ;;  %3353 = vmatprep.subr.bf16.mxu0 %v3352_v0 }
 0x1e4   : > { %3355 = vmatpush3.bf16.xpose.msra.mxu0 %v3354_v11 }
 0x1e6   : > { %v1762_v35 = vpop.f32.mrb[64].mxu0  ;;  %v2174_v44 = vpop.f32.mrb[62].mxu1 }
 0x1e7   : > { %v2369_v53 = vmul.f32 %v2174_v44, %v1757_v2  ;;  %v1764_v58 = vpop.f32.mrb[65].mxu0  ;;  %v2176_v62 = vpop.f32.mrb[63].mxu1 }
 0x1e9   : > { %v3356_v48 = vpack.c.bf16 %v2369_v53, %v2368_v5 }
 0x1ea   : > { %v1767_v9 = vpop.f32.mrb[66].mxu0  ;;  %v2179_v12 = vpop.f32.mrb[64].mxu1 }
 0x1eb   : > { %v4404_v13 = vmul.f32 %v2179_v12, %v1762_v35  ;;  %v1769_v16 = vpop.f32.mrb[67].mxu0  ;;  %v2181_v17 = vpop.f32.mrb[65].mxu1  ;;  %3357 = vmatprep.subr.bf16.mxu0 %v3356_v48 }
 0x1ec   : > { %3359 = vmatpush3.bf16.xpose.msra.mxu0 %v3358_v24 }
 0x1ee   : > { %v1772_v19 = vpop.f32.mrb[68].mxu0  ;;  %v2184_v1 = vpop.f32.mrb[66].mxu1 }
 0x1ef   : > { %v4409_v7 = vmul.f32 %v2184_v1, %v1767_v9  ;;  %v1774_v11 = vpop.f32.mrb[69].mxu0  ;;  %v2186_v20 = vpop.f32.mrb[67].mxu1 }
 0x1f1   : > { %v3362_v22 = vpack.c.bf16 %v4409_v7, %v4404_v13 }
 0x1f2   : > { %v1777_v52 = vpop.f32.mrb[70].mxu0  ;;  %v2189_v59 = vpop.f32.mrb[68].mxu1 }
 0x1f3   : > { %v4413_v63 = vmul.f32 %v2189_v59, %v1772_v19  ;;  %v1779_v23 = vpop.f32.mrb[71].mxu0  ;;  %v2191_v26 = vpop.f32.mrb[69].mxu1  ;;  %3197 = vmatmul.mubr.f32.vlgmr.msra.gmra.mrb[128].mxu0 %v3416_v42 }
 0x1f6   : > { %v1782_v27 = vpop.f32.mrb[72].mxu0  ;;  %v2194_v15 = vpop.f32.mrb[70].mxu1 }
 0x1f7   : > { %v4416_v21 = vmul.f32 %v2194_v15, %v1777_v52  ;;  %v1784_v24 = vpop.f32.mrb[73].mxu0  ;;  %v2196_v28 = vpop.f32.mrb[71].mxu1 }
 0x1f9   : > { %v3366_v30 = vpack.c.bf16 %v4416_v21, %v4413_v63 }
 0x1fa   : > { %v1787_v32 = vpop.f32.mrb[74].mxu0  ;;  %v2199_v33 = vpop.f32.mrb[72].mxu1 }
 0x1fb   : > { %v4420_v38 = vmul.f32 %v2199_v33, %v1782_v27  ;;  %v1789_v3 = vpop.f32.mrb[75].mxu0  ;;  %v2201_v10 = vpop.f32.mrb[73].mxu1 }
 0x1fe   : > { %v1792_v14 = vpop.f32.mrb[76].mxu0  ;;  %v2204_v39 = vpop.f32.mrb[74].mxu1 }
 0x1ff   : > { %v4422_v40 = vmul.f32 %v2204_v39, %v1787_v32  ;;  %v1794_v41 = vpop.f32.mrb[77].mxu0  ;;  %v2206_v43 = vpop.f32.mrb[75].mxu1 }
 0x201   : > { %v3370_v45 = vpack.c.bf16 %v4422_v40, %v4420_v38 }
 0x202   : > { %v1797_v47 = vpop.f32.mrb[78].mxu0  ;;  %v2209_v49 = vpop.f32.mrb[76].mxu1 }
 0x203   : > { %v4426_v37 = vmul.f32 %v2209_v49, %v1792_v14  ;;  %v1799_v18 = vpop.f32.mrb[79].mxu0  ;;  %v2211_v25 = vpop.f32.mrb[77].mxu1 }
 0x206   : > { %v1802_v29 = vpop.f32.mrb[80].mxu0  ;;  %v2214_v51 = vpop.f32.mrb[78].mxu1 }
 0x207   : > { %v4428_v54 = vmul.f32 %v2214_v51, %v1797_v47  ;;  %v1804_v55 = vpop.f32.mrb[81].mxu0  ;;  %v2216_v56 = vpop.f32.mrb[79].mxu1 }
 0x209   : > { %v3374_v57 = vpack.c.bf16 %v4428_v54, %v4426_v37 }
 0x20a   : > { %v1807_v60 = vpop.f32.mrb[82].mxu0  ;;  %v2219_v61 = vpop.f32.mrb[80].mxu1 }
 0x20b   : > { %v4432_v34 = vmul.f32 %v2219_v61, %v1802_v29  ;;  %v1809_v36 = vpop.f32.mrb[83].mxu0  ;;  %v2221_v46 = vpop.f32.mrb[81].mxu1 }
 0x20e   : > { %v1812_v50 = vpop.f32.mrb[84].mxu0  ;;  %v2224_v0 = vpop.f32.mrb[82].mxu1 }
 0x20f   : > { %v4434_v2 = vmul.f32 %v2224_v0, %v1807_v60  ;;  %v1814_v4 = vpop.f32.mrb[85].mxu0  ;;  %v2226_v5 = vpop.f32.mrb[83].mxu1 }
 0x211   : > { %v3378_v6 = vpack.c.bf16 %v4434_v2, %v4432_v34 }
 0x212   : > { %v1817_v8 = vpop.f32.mrb[86].mxu0  ;;  %v2229_v35 = vpop.f32.mrb[84].mxu1 }
 0x213   : > { %v4438_v44 = vmul.f32 %v2229_v35, %v1812_v50  ;;  %v1819_v53 = vpop.f32.mrb[87].mxu0  ;;  %v2231_v58 = vpop.f32.mrb[85].mxu1 }
 0x216   : > { %v1822_v62 = vpop.f32.mrb[88].mxu0  ;;  %v2234_v48 = vpop.f32.mrb[86].mxu1 }
 0x217   : > { %v4440_v9 = vmul.f32 %v2234_v48, %v1817_v8  ;;  %v1824_v12 = vpop.f32.mrb[89].mxu0  ;;  %v2236_v16 = vpop.f32.mrb[87].mxu1 }
 0x219   : > { %v3382_v17 = vpack.c.bf16 %v4440_v9, %v4438_v44 }
 0x21a   : > { %v1827_v19 = vpop.f32.mrb[90].mxu0  ;;  %v2239_v1 = vpop.f32.mrb[88].mxu1 }
 0x21b   : > { %v4444_v11 = vmul.f32 %v2239_v1, %v1822_v62  ;;  %v1829_v20 = vpop.f32.mrb[91].mxu0  ;;  %v2241_v52 = vpop.f32.mrb[89].mxu1 }
 0x21e   : > { %v1832_v59 = vpop.f32.mrb[92].mxu0  ;;  %v2244_v23 = vpop.f32.mrb[90].mxu1 }
 0x21f   : > { %v4446_v26 = vmul.f32 %v2244_v23, %v1827_v19  ;;  %v1834_v27 = vpop.f32.mrb[93].mxu0  ;;  %v2246_v15 = vpop.f32.mrb[91].mxu1 }
 0x221   : > { %v3386_v24 = vpack.c.bf16 %v4446_v26, %v4444_v11  ;;  %v2554_v11 = vshrl.u32 %v221_v31, 7 }
 0x222   : > { %v2249_v28 = vpop.f32.mrb[92].mxu1  ;;  %v1837_v32 = vpop.f32.mrb[94].mxu0 }
 0x223   : > { %v4450_v33 = vmul.f32 %v2249_v28, %v1832_v59  ;;  %v2251_v3 = vpop.f32.mrb[93].mxu1  ;;  %v1839_v10 = vpop.f32.mrb[95].mxu0 }
 0x226   : > { %v2254_v14 = vpop.f32.mrb[94].mxu1  ;;  %v1842_v39 = vpop.f32.mrb[96].mxu0 }
 0x227   : > { %v4452_v41 = vmul.f32 %v2254_v14, %v1837_v32  ;;  %v2256_v43 = vpop.f32.mrb[95].mxu1  ;;  %v1844_v47 = vpop.f32.mrb[97].mxu0 }
 0x229   : > { %v3390_v49 = vpack.c.bf16 %v4452_v41, %v4450_v33 }
 0x22a   : > { %v2259_v18 = vpop.f32.mrb[96].mxu1  ;;  %v1847_v25 = vpop.f32.mrb[98].mxu0 }
 0x22b   : > { %v2386_v29 = vmul.f32 %v2259_v18, %v1842_v39  ;;  %v2261_v51 = vpop.f32.mrb[97].mxu1  ;;  %v1849_v55 = vpop.f32.mrb[99].mxu0 }
 0x22e   : > { %v2264_v56 = vpop.f32.mrb[98].mxu1  ;;  %v1852_v60 = vpop.f32.mrb[100].mxu0 }
 0x22f   : > { %v2387_v61 = vmul.f32 %v2264_v56, %v1847_v25  ;;  %v2266_v36 = vpop.f32.mrb[99].mxu1  ;;  %v1854_v46 = vpop.f32.mrb[101].mxu0 }
 0x231   : > { %v3360_v50 = vpack.c.bf16 %v2387_v61, %v2386_v29 }
 0x232   : > { %v2269_v0 = vpop.f32.mrb[100].mxu1  ;;  %v1857_v4 = vpop.f32.mrb[102].mxu0 }
 0x233   : > { %v2388_v5 = vmul.f32 %v2269_v0, %v1852_v60  ;;  %v2271_v8 = vpop.f32.mrb[101].mxu1  ;;  %3361 = vmatprep.subr.bf16.mxu1 %v3360_v50  ;;  %v1859_v35 = vpop.f32.mrb[103].mxu0 }
 0x234   : > { %3363 = vmatpush3.bf16.xpose.msra.mxu1 %v3362_v22 }
 0x236   : > { %v2274_v53 = vpop.f32.mrb[102].mxu1  ;;  %v1862_v58 = vpop.f32.mrb[104].mxu0 }
 0x237   : > { %v2389_v62 = vmul.f32 %v2274_v53, %v1857_v4  ;;  %v2276_v48 = vpop.f32.mrb[103].mxu1  ;;  %v1864_v12 = vpop.f32.mrb[105].mxu0 }
 0x239   : > { %v3364_v16 = vpack.c.bf16 %v2389_v62, %v2388_v5 }
 0x23a   : > { %v2279_v19 = vpop.f32.mrb[104].mxu1  ;;  %v1867_v1 = vpop.f32.mrb[106].mxu0 }
 0x23b   : > { %v2390_v20 = vmul.f32 %v2279_v19, %v1862_v58  ;;  %v2281_v52 = vpop.f32.mrb[105].mxu1  ;;  %3365 = vmatprep.subr.bf16.mxu1 %v3364_v16  ;;  %v1869_v59 = vpop.f32.mrb[107].mxu0 }
 0x23c   : > { %3367 = vmatpush3.bf16.xpose.msra.mxu1 %v3366_v30 }
 0x23e   : > { %v2284_v23 = vpop.f32.mrb[106].mxu1  ;;  %v1872_v27 = vpop.f32.mrb[108].mxu0 }
 0x23f   : > { %v2391_v13 = vmul.f32 %v2284_v23, %v1867_v1  ;;  %v2286_v7 = vpop.f32.mrb[107].mxu1  ;;  %v1874_v22 = vpop.f32.mrb[109].mxu0 }
 0x241   : > { %v3368_v15 = vpack.c.bf16 %v2391_v13, %v2390_v20 }
 0x242   : > { %v2289_v28 = vpop.f32.mrb[108].mxu1  ;;  %v1877_v32 = vpop.f32.mrb[110].mxu0 }
 0x243   : > { %v2392_v3 = vmul.f32 %v2289_v28, %v1872_v27  ;;  %v2291_v10 = vpop.f32.mrb[109].mxu1  ;;  %3369 = vmatprep.subr.bf16.mxu1 %v3368_v15  ;;  %v1879_v14 = vpop.f32.mrb[111].mxu0  ;;  %v3417_v28 = vmov 1966171168  }
 0x244   : > { %3371 = vmatpush3.bf16.xpose.msra.mxu1 %v3370_v45 }
 0x246   : > { %v2294_v39 = vpop.f32.mrb[110].mxu1  ;;  %v1882_v43 = vpop.f32.mrb[112].mxu0 }
 0x247   : > { %v2393_v63 = vmul.f32 %v2294_v39, %v1877_v32  ;;  %v2296_v21 = vpop.f32.mrb[111].mxu1  ;;  %v1884_v30 = vpop.f32.mrb[113].mxu0  ;;  %v2551_v32 = vunpack.c.l.s4 %v3417_v28 }
 0x249   : > { %v3372_v47 = vpack.c.bf16 %v2393_v63, %v2392_v3  ;;  %v2552_v3 = vunpack.c.0.s8 %v2551_v32 }
 0x24a   : > { %v2299_v18 = vpop.f32.mrb[112].mxu1  ;;  %v1887_v25 = vpop.f32.mrb[114].mxu0 }
 0x24b   : > { %v2394_v29 = vmul.f32 %v2299_v18, %v1882_v43  ;;  %v2301_v51 = vpop.f32.mrb[113].mxu1  ;;  %3373 = vmatprep.subr.bf16.mxu1 %v3372_v47  ;;  %v1889_v55 = vpop.f32.mrb[115].mxu0  ;;  %v2555_v26 = vsub.s32 %v2552_v3, %v2554_v11 }
 0x24c   : > { %3375 = vmatpush3.bf16.xpose.msra.mxu1 %v3374_v57 }
 0x24e   : > { %v2304_v56 = vpop.f32.mrb[114].mxu1  ;;  %v1892_v60 = vpop.f32.mrb[116].mxu0 }
 0x24f   : > { %v2395_v38 = vmul.f32 %v2304_v56, %v1887_v25  ;;  %v2306_v40 = vpop.f32.mrb[115].mxu1  ;;  %v1894_v45 = vpop.f32.mrb[117].mxu0 }
 0x251   : > { %v3376_v61 = vpack.c.bf16 %v2395_v38, %v2394_v29 }
 0x252   : > { %v2309_v36 = vpop.f32.mrb[116].mxu1  ;;  %v1897_v46 = vpop.f32.mrb[118].mxu0 }
 0x253   : > { %v2396_v50 = vmul.f32 %v2309_v36, %v1892_v60  ;;  %v2311_v0 = vpop.f32.mrb[117].mxu1  ;;  %3377 = vmatprep.subr.bf16.mxu1 %v3376_v61  ;;  %v1899_v4 = vpop.f32.mrb[119].mxu0 }
 0x254   : > { %3379 = vmatpush3.bf16.xpose.msra.mxu1 %v3378_v6 }
 0x256   : > { %v2314_v5 = vpop.f32.mrb[118].mxu1  ;;  %v1902_v8 = vpop.f32.mrb[120].mxu0 }
 0x257   : > { %v2397_v37 = vmul.f32 %v2314_v5, %v1897_v46  ;;  %v2316_v54 = vpop.f32.mrb[119].mxu1  ;;  %v1904_v57 = vpop.f32.mrb[121].mxu0 }
 0x259   : > { %v3380_v35 = vpack.c.bf16 %v2397_v37, %v2396_v50 }
 0x25a   : > { %v2319_v53 = vpop.f32.mrb[120].mxu1  ;;  %v1907_v58 = vpop.f32.mrb[122].mxu0 }
 0x25b   : > { %v2398_v62 = vmul.f32 %v2319_v53, %v1902_v8  ;;  %v2321_v48 = vpop.f32.mrb[121].mxu1  ;;  %3381 = vmatprep.subr.bf16.mxu1 %v3380_v35  ;;  %v1909_v12 = vpop.f32.mrb[123].mxu0 }
 0x25c   : > { %3383 = vmatpush3.bf16.xpose.msra.mxu1 %v3382_v17 }
 0x25e   : > { %v2324_v16 = vpop.f32.mrb[122].mxu1  ;;  %v1912_v19 = vpop.f32.mrb[124].mxu0 }
 0x25f   : > { %v2399_v34 = vmul.f32 %v2324_v16, %v1907_v58  ;;  %v2326_v2 = vpop.f32.mrb[123].mxu1  ;;  %v1914_v6 = vpop.f32.mrb[125].mxu0 }
 0x261   : > { %v3384_v1 = vpack.c.bf16 %v2399_v34, %v2398_v62 }
 0x262   : > { %v2329_v20 = vpop.f32.mrb[124].mxu1  ;;  %v1917_v52 = vpop.f32.mrb[126].mxu0 }
 0x263   : > { %v2400_v59 = vmul.f32 %v2329_v20, %v1912_v19  ;;  %v2331_v23 = vpop.f32.mrb[125].mxu1  ;;  %3385 = vmatprep.subr.bf16.mxu1 %v3384_v1  ;;  %v1919_v27 = vpop.f32.mrb[127].mxu0 }
 0x264   : > { %3387 = vmatpush3.bf16.xpose.msra.mxu1 %v3386_v24 }
 0x266   : > { %v2334_v13 = vpop.f32.mrb[126].mxu1 }
 0x267   : > { %v2401_v44 = vmul.f32 %v2334_v13, %v1917_v52  ;;  %v2336_v9 = vpop.f32.mrb[127].mxu1 }
 0x269   : > { %v3388_v17 = vpack.c.bf16 %v2401_v44, %v2400_v59 }
 0x26b   : > { %3389 = vmatprep.subr.bf16.mxu1 %v3388_v17 }
 0x26c   : > { %3391 = vmatpush3.bf16.xpose.msra.mxu1 %v3390_v49 }
 0x273   : > { %3231 = vmatmul.mubr.f32.vlgmr.msra.gmra.mrb[128].mxu1 %v3416_v42 }
 0x2c6   : > { %v2468_v7 = vpop.f32.mrb[128].mxu0 }
 0x2c7   : > { %v2470_v22 = vpop.f32.mrb[129].mxu0 }
 0x2c8   : > { %v2548_v15 = vcombine.low %v2468_v7, %v2470_v22 }
 0x2ca   : > { %v2556_v14 = vrot.slane %v2548_v15, %v2555_v26 }
 0x346   : > { %v2539_v24 = vpop.f32.mrb[128].mxu1 }
 0x347   : > { %v2541_v10 = vpop.f32.mrb[129].mxu1 }
 0x348   : > { %v2549_v39 = vcombine.low %v2539_v24, %v2541_v10 }
 0x34a   : > { %v2563_v33 = vrot.slane %v2549_v39, %v2555_v26 }
 0x34c   : > { %v2564_v41 = vcombine.low %v2556_v14, %v2563_v33 }
 0x34e   : > { %v2571_v42 = vrot.slane %v2564_v41, %v2555_v26 }
 0x350   : > { %2577 = vst.msk [vmem:[%s219_s20] sm:$0xf] %vm2575_vm0, %v2571_v42 }
 0x351 PF: > { %s14_s15 = sadd.s32 1, %s3412_s15  }
 0x352   : > { %p11_p5 = scmp.ge.s32.totalorder %s14_s15, 5  }
 0x354   :  { %13 = sbr.rel (!%p11_p5) target bundleno = 1 (0x1), region = 69 }

</bundles_post_ra>
